<compile_context>
chip_gen: v6e
topology: v6e:2x2x1
jax: 0.10.0
libtpu: 0.0.40
codegen_flags: <defaults>
</compile_context>

<pallas_src>
import math
import jax
import jax.numpy as jnp
from jax import lax
from jax.experimental import pallas as pl
from jax.experimental.pallas import tpu as pltpu

# ----- scaled-down dims (roberta-base analogue + GATConv + MLP head) -----
B = 4            # batch == number of graph nodes fed to the GAT
S = 8            # sequence length
BS = B * S
H = 32           # hidden size
NH = 2           # attention heads
DH = H // NH     # per-head dim
FF = 4 * H       # intermediate (FFN) size
VOCAB = 100
MAXPOS = 64
PAD_IDX = 1      # roberta padding idx
N_LAYERS_FIRST = 2    # stands in for layers 0..6
N_LAYERS_SECOND = 2   # stands in for layers 6..12
N_LAYERS = N_LAYERS_FIRST + N_LAYERS_SECOND
GAT_OUT = 16          # stands in for GATConv out_channels=128
NUM_CLASSES = 3
LN_EPS = 1e-5
PACK = 128            # lane-dense packed output width: [logits | alpha | 0-pad]


# ---------------------------------------------------------------------------
# kernel helpers (all f32)
# ---------------------------------------------------------------------------
def _ln(x, g, b):
    mu = jnp.mean(x, axis=-1, keepdims=True)
    var = jnp.mean((x - mu) ** 2, axis=-1, keepdims=True)
    return (x - mu) * lax.rsqrt(var + LN_EPS) * g + b


def _softmax_last(s):
    s = s - jnp.max(s, axis=-1, keepdims=True)
    p = jnp.exp(s)
    return p / jnp.sum(p, axis=-1, keepdims=True)


# ---------------------------------------------------------------------------
# the layer-pipelined kernel: one grid step per encoder layer
# ---------------------------------------------------------------------------
def fused_forward_kernel(emb_ref, am_ref, adj_ref, eln_g_ref, eln_b_ref,
                         gat_w_ref, gat_asrc_ref, gat_adst_ref, gat_b_ref,
                         mlp_w_ref, mlp_b_ref,
                         wqkv_ref, wo_ref, wi_ref, wf_ref,
                         bqkv_ref, bi_ref, bln_ref,
                         out_ref, h_ref):
    l = pl.program_id(0)
    scale = 1.0 / math.sqrt(DH)

    # ---- step 0: embedding LayerNorm seeds the carried hidden state ----
    # TODO(synk): dropout omitted (eval-mode semantics).
    @pl.when(l == 0)
    def _():
        h_ref[...] = _ln(emb_ref[...], eln_g_ref[...], eln_b_ref[...])

    h = h_ref[...]                                               # (BS, H) f32

    # additive key-padding bias built in-kernel from the tiny (B, S) mask
    key_bias = ((1.0 - am_ref[...]) * -10000.0)[:, None, :]      # (B, 1, S)

    bln = bln_ref[...]                                           # (6, H): bo|ln1g|ln1b|bf|ln2g|ln2b

    # ---- fused QKV projection (bf16 MXU operands, f32 accumulation) ----
    qkv = jnp.dot(h.astype(jnp.bfloat16), wqkv_ref[...],
                  preferred_element_type=jnp.float32) + bqkv_ref[...]
    q = (qkv[:, 0:H] * scale).astype(jnp.bfloat16)               # pre-scaled q
    k = qkv[:, H:2 * H].astype(jnp.bfloat16)
    v = qkv[:, 2 * H:3 * H].astype(jnp.bfloat16)

    # ---- per-sequence attention, batched over B inside each head ----
    ctx_heads = []
    for hd in range(NH):
        lo = hd * DH
        qh = q[:, lo:lo + DH].reshape(B, S, DH)
        kh = k[:, lo:lo + DH].reshape(B, S, DH)
        vh = v[:, lo:lo + DH].reshape(B, S, DH)
        s = jnp.einsum('bqd,bkd->bqk', qh, kh,
                       preferred_element_type=jnp.float32) + key_bias
        p = _softmax_last(s)
        ctx = jnp.einsum('bqk,bkd->bqd', p.astype(jnp.bfloat16), vh,
                         preferred_element_type=jnp.float32)
        ctx_heads.append(ctx.reshape(BS, DH))
    ctx = jnp.concatenate(ctx_heads, axis=-1)                    # (BS, H), stays in vregs

    # ---- output projection + FFN + LayerNorms ----
    attn = jnp.dot(ctx.astype(jnp.bfloat16), wo_ref[...],
                   preferred_element_type=jnp.float32) + bln[0:1, :]
    h1 = _ln(attn + h, bln[1:2, :], bln[2:3, :])
    # TODO(synk): HF RoBERTa uses exact (erf) GELU; tanh approximation used here.
    inter = jax.nn.gelu(jnp.dot(h1.astype(jnp.bfloat16), wi_ref[...],
                                preferred_element_type=jnp.float32) + bi_ref[...])
    ffn = jnp.dot(inter.astype(jnp.bfloat16), wf_ref[...],
                  preferred_element_type=jnp.float32) + bln[3:4, :]
    h_new = _ln(ffn + h1, bln[4:5, :], bln[5:6, :])
    h_ref[...] = h_new

    # ---- last step: CLS pooling -> GATConv -> MLP head ----
    @pl.when(l == N_LAYERS - 1)
    def _():
        # CLS extraction (row b*S of every sequence) via one-hot selection matmul
        row = lax.broadcasted_iota(jnp.int32, (B, BS), 0)
        col = lax.broadcasted_iota(jnp.int32, (B, BS), 1)
        sel = (col == row * S).astype(jnp.float32)
        sent = jnp.dot(sel, h_new, preferred_element_type=jnp.float32)   # (B, H)

        adj = adj_ref[...]                                               # (B, B)
        hfeat = jnp.dot(sent, gat_w_ref[...], preferred_element_type=jnp.float32)
        a_src = jnp.sum(hfeat * gat_asrc_ref[...], axis=-1, keepdims=True)
        a_dst = jnp.sum(hfeat * gat_adst_ref[...], axis=-1, keepdims=True)
        e = a_dst + a_src.T                        # e[i, j] = a_dst[i] + a_src[j]
        e = jnp.where(e > 0, e, 0.2 * e)           # LeakyReLU(negative_slope=0.2)
        e = jnp.where(adj > 0, e, -1e9)            # mask non-edges
        p = _softmax_last(e)
        p = jnp.where(adj > 0, p, 0.0)             # exact zeros on non-edges
        gat_out = jnp.dot(p, hfeat, preferred_element_type=jnp.float32) + gat_b_ref[...]
        logits = jnp.dot(gat_out, mlp_w_ref[...],
                         preferred_element_type=jnp.float32) + mlp_b_ref[...]
        # lane-dense packed output: [logits | alpha | zero pad] stored in one go
        # TODO(synk): PyG returns per-edge alpha; we return the dense [N,N] row-softmax.
        pad = jnp.zeros((B, PACK - NUM_CLASSES - B), jnp.float32)
        out_ref[...] = jnp.concatenate([logits, p, pad], axis=-1)


# ---------------------------------------------------------------------------
# pallas_call wrapper: grid over layers, per-layer weight streaming
# ---------------------------------------------------------------------------
def fused_forward(emb, attention_mask_f32, adj, params):
    resident = (
        (emb,                     pl.BlockSpec((BS, H), lambda l: (0, 0))),
        (attention_mask_f32,      pl.BlockSpec((B, S), lambda l: (0, 0))),
        (adj,                     pl.BlockSpec((B, B), lambda l: (0, 0))),
        (params["emb_ln_g"],      pl.BlockSpec((1, H), lambda l: (0, 0))),
        (params["emb_ln_b"],      pl.BlockSpec((1, H), lambda l: (0, 0))),
        (params["gat_w"],         pl.BlockSpec((H, GAT_OUT), lambda l: (0, 0))),
        (params["gat_att_src"],   pl.BlockSpec((1, GAT_OUT), lambda l: (0, 0))),
        (params["gat_att_dst"],   pl.BlockSpec((1, GAT_OUT), lambda l: (0, 0))),
        (params["gat_b"],         pl.BlockSpec((1, GAT_OUT), lambda l: (0, 0))),
        (params["mlp_w"],         pl.BlockSpec((GAT_OUT, NUM_CLASSES), lambda l: (0, 0))),
        (params["mlp_b"],         pl.BlockSpec((1, NUM_CLASSES), lambda l: (0, 0))),
    )
    streamed = (
        (params["wqkv"], pl.BlockSpec((None, H, 3 * H), lambda l: (l, 0, 0))),
        (params["wo"],   pl.BlockSpec((None, H, H),     lambda l: (l, 0, 0))),
        (params["wi"],   pl.BlockSpec((None, H, FF),    lambda l: (l, 0, 0))),
        (params["wf"],   pl.BlockSpec((None, FF, H),    lambda l: (l, 0, 0))),
        (params["bqkv"], pl.BlockSpec((None, 1, 3 * H), lambda l: (l, 0, 0))),
        (params["bi"],   pl.BlockSpec((None, 1, FF),    lambda l: (l, 0, 0))),
        (params["b_ln"], pl.BlockSpec((None, 6, H),     lambda l: (l, 0, 0))),
    )
    args = tuple(a for a, _ in resident) + tuple(a for a, _ in streamed)
    specs = [s for _, s in resident] + [s for _, s in streamed]

    packed = pl.pallas_call(
        fused_forward_kernel,
        out_shape=jax.ShapeDtypeStruct((B, PACK), jnp.float32),
        grid_spec=pltpu.PrefetchScalarGridSpec(
            num_scalar_prefetch=0,
            grid=(N_LAYERS,),
            in_specs=specs,
            out_specs=pl.BlockSpec((B, PACK), lambda l: (0, 0)),
            scratch_shapes=[pltpu.VMEM((BS, H), jnp.float32)],   # carried hidden state
        ),
        compiler_params=pltpu.CompilerParams(
            dimension_semantics=("arbitrary",)),
    )(*args)
    logits = packed[:, :NUM_CLASSES]
    alpha = packed[:, NUM_CLASSES:NUM_CLASSES + B]
    return logits, alpha


# ---------------------------------------------------------------------------
# glue in plain JAX: embedding gathers, masks, adjacency
# ---------------------------------------------------------------------------
def edge_index_to_adj(edge_index, n):
    src, dst = edge_index
    adj = jnp.zeros((n, n), jnp.float32).at[dst, src].set(1.0)
    # GATConv add_self_loops=True
    return jnp.maximum(adj, jnp.eye(n, dtype=jnp.float32))


def roberta_gat_forward(params, input_ids, attention_mask, adj):
    # embedding gathers (data-dependent) stay in plain JAX; LayerNorm is in-kernel
    pad_mask = (input_ids != PAD_IDX).astype(jnp.int32)
    position_ids = jnp.cumsum(pad_mask, axis=1) * pad_mask + PAD_IDX
    we = jnp.take(params["word_emb"], input_ids, axis=0)
    pe = jnp.take(params["pos_emb"], position_ids, axis=0)
    te = params["type_emb"][0][None, None, :]          # token_type_ids == 0
    emb = (we + pe + te).reshape(BS, H).astype(jnp.float32)
    am = attention_mask.astype(jnp.float32)            # (B, S), bias built in-kernel
    return fused_forward(emb, am, adj, params)


# ---------------------------------------------------------------------------
# deterministic parameter init (encoder weights stacked over L, stored bf16)
# ---------------------------------------------------------------------------
def init_params(key):
    keys = iter(jax.random.split(key, 64))

    def nrm(shape, scale=0.02, dtype=jnp.float32):
        return (scale * jax.random.normal(next(keys), shape)).astype(dtype)

    zeros = lambda s: jnp.zeros(s, jnp.float32)
    ones = lambda s: jnp.ones(s, jnp.float32)

    # per-layer bias/LN vectors packed as [L, 6, H]: bo|ln1g|ln1b|bf|ln2g|ln2b
    bln_one = jnp.stack([jnp.zeros(H), jnp.ones(H), jnp.zeros(H),
                         jnp.zeros(H), jnp.ones(H), jnp.zeros(H)]).astype(jnp.float32)

    return {
        "word_emb": nrm((VOCAB, H)),
        "pos_emb": nrm((MAXPOS, H)),
        "type_emb": nrm((1, H)),
        "emb_ln_g": ones((1, H)),
        "emb_ln_b": zeros((1, H)),
        # encoder matmul weights stacked over layers, stored bf16 (MXU operands)
        "wqkv": nrm((N_LAYERS, H, 3 * H), dtype=jnp.bfloat16),   # [Wq | Wk | Wv]
        "wo": nrm((N_LAYERS, H, H), dtype=jnp.bfloat16),
        "wi": nrm((N_LAYERS, H, FF), dtype=jnp.bfloat16),
        "wf": nrm((N_LAYERS, FF, H), dtype=jnp.bfloat16),
        "bqkv": zeros((N_LAYERS, 1, 3 * H)),
        "bi": zeros((N_LAYERS, 1, FF)),
        "b_ln": jnp.tile(bln_one[None], (N_LAYERS, 1, 1)),
        # GAT + MLP head (tiny, kept f32)
        "gat_w": nrm((H, GAT_OUT)),
        "gat_att_src": nrm((1, GAT_OUT)),
        "gat_att_dst": nrm((1, GAT_OUT)),
        "gat_b": zeros((1, GAT_OUT)),
        "mlp_w": nrm((GAT_OUT, NUM_CLASSES)),
        "mlp_b": zeros((1, NUM_CLASSES)),
    }


if __name__ == "__main__":
    key = jax.random.PRNGKey(0)
    pkey, dkey = jax.random.split(key)
    params = init_params(pkey)

    input_ids = jax.random.randint(dkey, (B, S), 2, VOCAB).astype(jnp.int32)
    attention_mask = jnp.ones((B, S), jnp.int32)
    edge_index = jnp.array([[0, 1, 1, 2, 3],
                            [1, 0, 2, 3, 0]], dtype=jnp.int32)
    adj = edge_index_to_adj(edge_index, B)

    logits, attention_weights = roberta_gat_forward(
        params, input_ids, attention_mask, adj)
    jax.block_until_ready((logits, attention_weights))
    assert logits.shape == (B, NUM_CLASSES)
    assert attention_weights.shape == (B, B)
    print("KERNEL_OK")
</pallas_src>

<mosaic_0001>
module attributes {stable_mosaic.version = 11 : i64} {
  func.func @fused_forward_kernel(%arg0: i32, %arg1: memref<32x32xf32, #tpu.memory_space<vmem>>, %arg2: memref<4x8xf32, #tpu.memory_space<vmem>>, %arg3: memref<4x4xf32, #tpu.memory_space<vmem>>, %arg4: memref<1x32xf32, #tpu.memory_space<vmem>>, %arg5: memref<1x32xf32, #tpu.memory_space<vmem>>, %arg6: memref<32x16xf32, #tpu.memory_space<vmem>>, %arg7: memref<1x16xf32, #tpu.memory_space<vmem>>, %arg8: memref<1x16xf32, #tpu.memory_space<vmem>>, %arg9: memref<1x16xf32, #tpu.memory_space<vmem>>, %arg10: memref<16x3xf32, #tpu.memory_space<vmem>>, %arg11: memref<1x3xf32, #tpu.memory_space<vmem>>, %arg12: memref<1x32x96xbf16, #tpu.memory_space<vmem>>, %arg13: memref<1x32x32xbf16, #tpu.memory_space<vmem>>, %arg14: memref<1x32x128xbf16, #tpu.memory_space<vmem>>, %arg15: memref<1x128x32xbf16, #tpu.memory_space<vmem>>, %arg16: memref<1x1x96xf32, #tpu.memory_space<vmem>>, %arg17: memref<1x1x128xf32, #tpu.memory_space<vmem>>, %arg18: memref<1x6x32xf32, #tpu.memory_space<vmem>>, %arg19: memref<4x128xf32, #tpu.memory_space<vmem>>, %arg20: memref<32x32xf32, #tpu.memory_space<vmem>>) attributes {dimension_semantics = [#tpu.dimension_semantics<arbitrary>], iteration_bounds = array<i64: 4>, scalar_prefetch = 0 : i64, scratch_operands = 1 : i64, tpu.core_type = #tpu.core_type<tc>, window_params = [{pipeline_mode = #tpu.pipeline_mode<synchronous>, transform_indices = @transform_0, window_bounds = array<i64: 32, 32>}, {pipeline_mode = #tpu.pipeline_mode<synchronous>, transform_indices = @transform_1, window_bounds = array<i64: 4, 8>}, {pipeline_mode = #tpu.pipeline_mode<synchronous>, transform_indices = @transform_2, window_bounds = array<i64: 4, 4>}, {pipeline_mode = #tpu.pipeline_mode<synchronous>, transform_indices = @transform_3, window_bounds = array<i64: 1, 32>}, {pipeline_mode = #tpu.pipeline_mode<synchronous>, transform_indices = @transform_4, window_bounds = array<i64: 1, 32>}, {pipeline_mode = #tpu.pipeline_mode<synchronous>, transform_indices = @transform_5, window_bounds = array<i64: 32, 16>}, {pipeline_mode = #tpu.pipeline_mode<synchronous>, transform_indices = @transform_6, window_bounds = array<i64: 1, 16>}, {pipeline_mode = #tpu.pipeline_mode<synchronous>, transform_indices = @transform_7, window_bounds = array<i64: 1, 16>}, {pipeline_mode = #tpu.pipeline_mode<synchronous>, transform_indices = @transform_8, window_bounds = array<i64: 1, 16>}, {pipeline_mode = #tpu.pipeline_mode<synchronous>, transform_indices = @transform_9, window_bounds = array<i64: 16, 3>}, {pipeline_mode = #tpu.pipeline_mode<synchronous>, transform_indices = @transform_10, window_bounds = array<i64: 1, 3>}, {transform_indices = @transform_11, window_bounds = array<i64: 1, 32, 96>}, {transform_indices = @transform_12, window_bounds = array<i64: 1, 32, 32>}, {transform_indices = @transform_13, window_bounds = array<i64: 1, 32, 128>}, {transform_indices = @transform_14, window_bounds = array<i64: 1, 128, 32>}, {transform_indices = @transform_15, window_bounds = array<i64: 1, 1, 96>}, {transform_indices = @transform_16, window_bounds = array<i64: 1, 1, 128>}, {transform_indices = @transform_17, window_bounds = array<i64: 1, 6, 32>}, {pipeline_mode = #tpu.pipeline_mode<synchronous>, transform_indices = @transform_18, window_bounds = array<i64: 4, 128>}]} {
    %c0_i32 = arith.constant 0 : i32
    %0 = arith.cmpi eq, %arg0, %c0_i32 : i32
    %1 = arith.extui %0 : i1 to i32
    %c0_i32_0 = arith.constant 0 : i32
    %2 = arith.cmpi ne, %1, %c0_i32_0 : i32
    scf.if %2 {
      %c0_56 = arith.constant 0 : index
      %c0_57 = arith.constant 0 : index
      %160 = vector.load %arg1[%c0_56, %c0_57] : memref<32x32xf32, #tpu.memory_space<vmem>>, vector<32x32xf32>
      %c0_58 = arith.constant 0 : index
      %c0_59 = arith.constant 0 : index
      %161 = vector.load %arg4[%c0_58, %c0_59] : memref<1x32xf32, #tpu.memory_space<vmem>>, vector<1x32xf32>
      %c0_60 = arith.constant 0 : index
      %c0_61 = arith.constant 0 : index
      %162 = vector.load %arg5[%c0_60, %c0_61] : memref<1x32xf32, #tpu.memory_space<vmem>>, vector<1x32xf32>
      %cst_62 = arith.constant dense<0.000000e+00> : vector<32xf32>
      %163 = vector.multi_reduction <add>, %160, %cst_62 [1] : vector<32x32xf32> to vector<32xf32>
      %164 = vector.shape_cast %163 : vector<32xf32> to vector<32x1xf32>
      %cst_63 = arith.constant 3.200000e+01 : f32
      %165 = vector.broadcast %cst_63 : f32 to vector<32x1xf32>
      %166 = arith.divf %164, %165 : vector<32x1xf32>
      %167 = vector.broadcast %166 : vector<32x1xf32> to vector<32x32xf32>
      %168 = arith.subf %160, %167 : vector<32x32xf32>
      %169 = arith.mulf %168, %168 : vector<32x32xf32>
      %cst_64 = arith.constant dense<0.000000e+00> : vector<32xf32>
      %170 = vector.multi_reduction <add>, %169, %cst_64 [1] : vector<32x32xf32> to vector<32xf32>
      %171 = vector.shape_cast %170 : vector<32xf32> to vector<32x1xf32>
      %cst_65 = arith.constant 3.200000e+01 : f32
      %172 = vector.broadcast %cst_65 : f32 to vector<32x1xf32>
      %173 = arith.divf %171, %172 : vector<32x1xf32>
      %174 = vector.broadcast %166 : vector<32x1xf32> to vector<32x32xf32>
      %175 = arith.subf %160, %174 : vector<32x32xf32>
      %cst_66 = arith.constant 9.99999974E-6 : f32
      %176 = vector.broadcast %cst_66 : f32 to vector<32x1xf32>
      %177 = arith.addf %173, %176 : vector<32x1xf32>
      %178 = math.rsqrt %177 : vector<32x1xf32>
      %179 = vector.broadcast %178 : vector<32x1xf32> to vector<32x32xf32>
      %180 = arith.mulf %175, %179 : vector<32x32xf32>
      %181 = vector.broadcast %161 : vector<1x32xf32> to vector<32x32xf32>
      %182 = arith.mulf %180, %181 : vector<32x32xf32>
      %183 = vector.broadcast %162 : vector<1x32xf32> to vector<32x32xf32>
      %184 = arith.addf %182, %183 : vector<32x32xf32>
      %c0_67 = arith.constant 0 : index
      %c0_68 = arith.constant 0 : index
      %185 = vector.load %arg20[%c0_67, %c0_68] : memref<32x32xf32, #tpu.memory_space<vmem>>, vector<32x32xf32>
      tpu.vector_store %arg20[%c0_67, %c0_68], %184 {strides = array<i32>} : memref<32x32xf32, #tpu.memory_space<vmem>>, vector<32x32xf32>,
    } else {
    }
    %c0 = arith.constant 0 : index
    %c0_1 = arith.constant 0 : index
    %3 = vector.load %arg20[%c0, %c0_1] : memref<32x32xf32, #tpu.memory_space<vmem>>, vector<32x32xf32>
    %c0_2 = arith.constant 0 : index
    %c0_3 = arith.constant 0 : index
    %4 = vector.load %arg2[%c0_2, %c0_3] : memref<4x8xf32, #tpu.memory_space<vmem>>, vector<4x8xf32>
    %cst = arith.constant 1.000000e+00 : f32
    %5 = vector.broadcast %cst : f32 to vector<4x8xf32>
    %6 = arith.subf %5, %4 : vector<4x8xf32>
    %cst_4 = arith.constant -1.000000e+04 : f32
    %7 = vector.broadcast %cst_4 : f32 to vector<4x8xf32>
    %8 = arith.mulf %6, %7 : vector<4x8xf32>
    %9 = vector.shape_cast %8 : vector<4x8xf32> to vector<4x1x8xf32>
    %c0_5 = arith.constant 0 : index
    %c0_6 = arith.constant 0 : index
    %c0_7 = arith.constant 0 : index
    %10 = vector.load %arg18[%c0_5, %c0_6, %c0_7] : memref<1x6x32xf32, #tpu.memory_space<vmem>>, vector<1x6x32xf32>
    %11 = vector.shape_cast %10 : vector<1x6x32xf32> to vector<6x32xf32>
    %12 = arith.truncf %3 : vector<32x32xf32> to vector<32x32xbf16>
    %c0_8 = arith.constant 0 : index
    %c0_9 = arith.constant 0 : index
    %c0_10 = arith.constant 0 : index
    %13 = vector.load %arg12[%c0_8, %c0_9, %c0_10] : memref<1x32x96xbf16, #tpu.memory_space<vmem>>, vector<1x32x96xbf16>
    %14 = vector.shape_cast %13 : vector<1x32x96xbf16> to vector<32x96xbf16>
    %cst_11 = arith.constant dense<0.000000e+00> : vector<32x96xf32>
    %15 = tpu.matmul %12, %14, %cst_11 {dimension_numbers = #tpu.dot_dimension_numbers<[1], [0], [0], [1], [0, 0, 1, 1], [], []>} : vector<32x32xbf16>, vector<32x96xbf16>, vector<32x96xf32> -> vector<32x96xf32>
    %c0_12 = arith.constant 0 : index
    %c0_13 = arith.constant 0 : index
    %c0_14 = arith.constant 0 : index
    %16 = vector.load %arg16[%c0_12, %c0_13, %c0_14] : memref<1x1x96xf32, #tpu.memory_space<vmem>>, vector<1x1x96xf32>
    %17 = vector.shape_cast %16 : vector<1x1x96xf32> to vector<1x96xf32>
    %18 = vector.broadcast %17 : vector<1x96xf32> to vector<32x96xf32>
    %19 = arith.addf %15, %18 : vector<32x96xf32>
    %20 = vector.extract_strided_slice %19 {offsets = [0, 0], sizes = [32, 32], strides = [1, 1]} : vector<32x96xf32> to vector<32x32xf32>
    %cst_15 = arith.constant 2.500000e-01 : f32
    %21 = vector.broadcast %cst_15 : f32 to vector<32x32xf32>
    %22 = arith.mulf %20, %21 : vector<32x32xf32>
    %23 = arith.truncf %22 : vector<32x32xf32> to vector<32x32xbf16>
    %24 = vector.extract_strided_slice %19 {offsets = [0, 32], sizes = [32, 32], strides = [1, 1]} : vector<32x96xf32> to vector<32x32xf32>
    %25 = arith.truncf %24 : vector<32x32xf32> to vector<32x32xbf16>
    %26 = vector.extract_strided_slice %19 {offsets = [0, 64], sizes = [32, 32], strides = [1, 1]} : vector<32x96xf32> to vector<32x32xf32>
    %27 = arith.truncf %26 : vector<32x32xf32> to vector<32x32xbf16>
    %28 = vector.extract_strided_slice %23 {offsets = [0, 0], sizes = [32, 16], strides = [1, 1]} : vector<32x32xbf16> to vector<32x16xbf16>
    %29 = vector.shape_cast %28 : vector<32x16xbf16> to vector<4x8x16xbf16>
    %30 = vector.extract_strided_slice %25 {offsets = [0, 0], sizes = [32, 16], strides = [1, 1]} : vector<32x32xbf16> to vector<32x16xbf16>
    %31 = vector.shape_cast %30 : vector<32x16xbf16> to vector<4x8x16xbf16>
    %32 = vector.extract_strided_slice %27 {offsets = [0, 0], sizes = [32, 16], strides = [1, 1]} : vector<32x32xbf16> to vector<32x16xbf16>
    %33 = vector.shape_cast %32 : vector<32x16xbf16> to vector<4x8x16xbf16>
    "tpu.trace_start"() <{level = 10 : i32, message = "bqd,bkd->bqk"}> : () -> ()
    %cst_16 = arith.constant dense<0.000000e+00> : vector<4x8x8xf32>
    %34 = tpu.matmul %29, %31, %cst_16 {dimension_numbers = #tpu.dot_dimension_numbers<[2], [2], [1], [1], [0, 0, 0, 1, 1, 1], [0], [0]>} : vector<4x8x16xbf16>, vector<4x8x16xbf16>, vector<4x8x8xf32> -> vector<4x8x8xf32>
    "tpu.trace_stop"() : () -> ()
    %35 = vector.broadcast %9 : vector<4x1x8xf32> to vector<4x8x8xf32>
    %36 = arith.addf %34, %35 : vector<4x8x8xf32>
    %cst_17 = arith.constant dense<0xFF800000> : vector<4x8xf32>
    %37 = vector.multi_reduction <maximumf>, %36, %cst_17 [2] : vector<4x8x8xf32> to vector<4x8xf32>
    %38 = vector.shape_cast %37 : vector<4x8xf32> to vector<4x8x1xf32>
    %39 = vector.broadcast %38 : vector<4x8x1xf32> to vector<4x8x8xf32>
    %40 = arith.subf %36, %39 : vector<4x8x8xf32>
    %41 = math.exp %40 : vector<4x8x8xf32>
    %cst_18 = arith.constant dense<0.000000e+00> : vector<4x8xf32>
    %42 = vector.multi_reduction <add>, %41, %cst_18 [2] : vector<4x8x8xf32> to vector<4x8xf32>
    %43 = vector.shape_cast %42 : vector<4x8xf32> to vector<4x8x1xf32>
    %44 = vector.broadcast %43 : vector<4x8x1xf32> to vector<4x8x8xf32>
    %45 = arith.divf %41, %44 : vector<4x8x8xf32>
    %46 = arith.truncf %45 : vector<4x8x8xf32> to vector<4x8x8xbf16>
    "tpu.trace_start"() <{level = 10 : i32, message = "bqk,bkd->bqd"}> : () -> ()
    %cst_19 = arith.constant dense<0.000000e+00> : vector<4x8x16xf32>
    %47 = tpu.matmul %46, %33, %cst_19 {dimension_numbers = #tpu.dot_dimension_numbers<[2], [1], [1], [2], [0, 0, 0, 1, 1, 2], [0], [0]>} : vector<4x8x8xbf16>, vector<4x8x16xbf16>, vector<4x8x16xf32> -> vector<4x8x16xf32>
    "tpu.trace_stop"() : () -> ()
    %48 = vector.shape_cast %47 : vector<4x8x16xf32> to vector<32x16xf32>
    %49 = vector.extract_strided_slice %23 {offsets = [0, 16], sizes = [32, 16], strides = [1, 1]} : vector<32x32xbf16> to vector<32x16xbf16>
    %50 = vector.shape_cast %49 : vector<32x16xbf16> to vector<4x8x16xbf16>
    %51 = vector.extract_strided_slice %25 {offsets = [0, 16], sizes = [32, 16], strides = [1, 1]} : vector<32x32xbf16> to vector<32x16xbf16>
    %52 = vector.shape_cast %51 : vector<32x16xbf16> to vector<4x8x16xbf16>
    %53 = vector.extract_strided_slice %27 {offsets = [0, 16], sizes = [32, 16], strides = [1, 1]} : vector<32x32xbf16> to vector<32x16xbf16>
    %54 = vector.shape_cast %53 : vector<32x16xbf16> to vector<4x8x16xbf16>
    "tpu.trace_start"() <{level = 10 : i32, message = "bqd,bkd->bqk"}> : () -> ()
    %cst_20 = arith.constant dense<0.000000e+00> : vector<4x8x8xf32>
    %55 = tpu.matmul %50, %52, %cst_20 {dimension_numbers = #tpu.dot_dimension_numbers<[2], [2], [1], [1], [0, 0, 0, 1, 1, 1], [0], [0]>} : vector<4x8x16xbf16>, vector<4x8x16xbf16>, vector<4x8x8xf32> -> vector<4x8x8xf32>
    "tpu.trace_stop"() : () -> ()
    %56 = vector.broadcast %9 : vector<4x1x8xf32> to vector<4x8x8xf32>
    %57 = arith.addf %55, %56 : vector<4x8x8xf32>
    %cst_21 = arith.constant dense<0xFF800000> : vector<4x8xf32>
    %58 = vector.multi_reduction <maximumf>, %57, %cst_21 [2] : vector<4x8x8xf32> to vector<4x8xf32>
    %59 = vector.shape_cast %58 : vector<4x8xf32> to vector<4x8x1xf32>
    %60 = vector.broadcast %59 : vector<4x8x1xf32> to vector<4x8x8xf32>
    %61 = arith.subf %57, %60 : vector<4x8x8xf32>
    %62 = math.exp %61 : vector<4x8x8xf32>
    %cst_22 = arith.constant dense<0.000000e+00> : vector<4x8xf32>
    %63 = vector.multi_reduction <add>, %62, %cst_22 [2] : vector<4x8x8xf32> to vector<4x8xf32>
    %64 = vector.shape_cast %63 : vector<4x8xf32> to vector<4x8x1xf32>
    %65 = vector.broadcast %64 : vector<4x8x1xf32> to vector<4x8x8xf32>
    %66 = arith.divf %62, %65 : vector<4x8x8xf32>
    %67 = arith.truncf %66 : vector<4x8x8xf32> to vector<4x8x8xbf16>
    "tpu.trace_start"() <{level = 10 : i32, message = "bqk,bkd->bqd"}> : () -> ()
    %cst_23 = arith.constant dense<0.000000e+00> : vector<4x8x16xf32>
    %68 = tpu.matmul %67, %54, %cst_23 {dimension_numbers = #tpu.dot_dimension_numbers<[2], [1], [1], [2], [0, 0, 0, 1, 1, 2], [0], [0]>} : vector<4x8x8xbf16>, vector<4x8x16xbf16>, vector<4x8x16xf32> -> vector<4x8x16xf32>
    "tpu.trace_stop"() : () -> ()
    %69 = vector.shape_cast %68 : vector<4x8x16xf32> to vector<32x16xf32>
    %70 = tpu.concatenate %48, %69 in 1 : vector<32x16xf32>, vector<32x16xf32> -> vector<32x32xf32>
    %71 = arith.truncf %70 : vector<32x32xf32> to vector<32x32xbf16>
    %c0_24 = arith.constant 0 : index
    %c0_25 = arith.constant 0 : index
    %c0_26 = arith.constant 0 : index
    %72 = vector.load %arg13[%c0_24, %c0_25, %c0_26] : memref<1x32x32xbf16, #tpu.memory_space<vmem>>, vector<1x32x32xbf16>
    %73 = vector.shape_cast %72 : vector<1x32x32xbf16> to vector<32x32xbf16>
    %cst_27 = arith.constant dense<0.000000e+00> : vector<32x32xf32>
    %74 = tpu.matmul %71, %73, %cst_27 {dimension_numbers = #tpu.dot_dimension_numbers<[1], [0], [0], [1], [0, 0, 1, 1], [], []>} : vector<32x32xbf16>, vector<32x32xbf16>, vector<32x32xf32> -> vector<32x32xf32>
    %75 = vector.extract_strided_slice %11 {offsets = [0, 0], sizes = [1, 32], strides = [1, 1]} : vector<6x32xf32> to vector<1x32xf32>
    %76 = vector.broadcast %75 : vector<1x32xf32> to vector<32x32xf32>
    %77 = arith.addf %74, %76 : vector<32x32xf32>
    %78 = arith.addf %77, %3 : vector<32x32xf32>
    %79 = vector.extract_strided_slice %11 {offsets = [1, 0], sizes = [1, 32], strides = [1, 1]} : vector<6x32xf32> to vector<1x32xf32>
    %80 = vector.extract_strided_slice %11 {offsets = [2, 0], sizes = [1, 32], strides = [1, 1]} : vector<6x32xf32> to vector<1x32xf32>
    %cst_28 = arith.constant dense<0.000000e+00> : vector<32xf32>
    %81 = vector.multi_reduction <add>, %78, %cst_28 [1] : vector<32x32xf32> to vector<32xf32>
    %82 = vector.shape_cast %81 : vector<32xf32> to vector<32x1xf32>
    %cst_29 = arith.constant 3.200000e+01 : f32
    %83 = vector.broadcast %cst_29 : f32 to vector<32x1xf32>
    %84 = arith.divf %82, %83 : vector<32x1xf32>
    %85 = vector.broadcast %84 : vector<32x1xf32> to vector<32x32xf32>
    %86 = arith.subf %78, %85 : vector<32x32xf32>
    %87 = arith.mulf %86, %86 : vector<32x32xf32>
    %cst_30 = arith.constant dense<0.000000e+00> : vector<32xf32>
    %88 = vector.multi_reduction <add>, %87, %cst_30 [1] : vector<32x32xf32> to vector<32xf32>
    %89 = vector.shape_cast %88 : vector<32xf32> to vector<32x1xf32>
    %cst_31 = arith.constant 3.200000e+01 : f32
    %90 = vector.broadcast %cst_31 : f32 to vector<32x1xf32>
    %91 = arith.divf %89, %90 : vector<32x1xf32>
    %92 = vector.broadcast %84 : vector<32x1xf32> to vector<32x32xf32>
    %93 = arith.subf %78, %92 : vector<32x32xf32>
    %cst_32 = arith.constant 9.99999974E-6 : f32
    %94 = vector.broadcast %cst_32 : f32 to vector<32x1xf32>
    %95 = arith.addf %91, %94 : vector<32x1xf32>
    %96 = math.rsqrt %95 : vector<32x1xf32>
    %97 = vector.broadcast %96 : vector<32x1xf32> to vector<32x32xf32>
    %98 = arith.mulf %93, %97 : vector<32x32xf32>
    %99 = vector.broadcast %79 : vector<1x32xf32> to vector<32x32xf32>
    %100 = arith.mulf %98, %99 : vector<32x32xf32>
    %101 = vector.broadcast %80 : vector<1x32xf32> to vector<32x32xf32>
    %102 = arith.addf %100, %101 : vector<32x32xf32>
    %103 = arith.truncf %102 : vector<32x32xf32> to vector<32x32xbf16>
    %c0_33 = arith.constant 0 : index
    %c0_34 = arith.constant 0 : index
    %c0_35 = arith.constant 0 : index
    %104 = vector.load %arg14[%c0_33, %c0_34, %c0_35] : memref<1x32x128xbf16, #tpu.memory_space<vmem>>, vector<1x32x128xbf16>
    %105 = vector.shape_cast %104 : vector<1x32x128xbf16> to vector<32x128xbf16>
    %cst_36 = arith.constant dense<0.000000e+00> : vector<32x128xf32>
    %106 = tpu.matmul %103, %105, %cst_36 {dimension_numbers = #tpu.dot_dimension_numbers<[1], [0], [0], [1], [0, 0, 1, 1], [], []>} : vector<32x32xbf16>, vector<32x128xbf16>, vector<32x128xf32> -> vector<32x128xf32>
    %c0_37 = arith.constant 0 : index
    %c0_38 = arith.constant 0 : index
    %c0_39 = arith.constant 0 : index
    %107 = vector.load %arg17[%c0_37, %c0_38, %c0_39] : memref<1x1x128xf32, #tpu.memory_space<vmem>>, vector<1x1x128xf32>
    %108 = vector.shape_cast %107 : vector<1x1x128xf32> to vector<1x128xf32>
    %109 = vector.broadcast %108 : vector<1x128xf32> to vector<32x128xf32>
    %110 = arith.addf %106, %109 : vector<32x128xf32>
    %111 = arith.mulf %110, %110 : vector<32x128xf32>
    %112 = arith.mulf %110, %111 : vector<32x128xf32>
    %cst_40 = arith.constant 4.471500e-02 : f32
    %113 = vector.broadcast %cst_40 : f32 to vector<32x128xf32>
    %114 = arith.mulf %113, %112 : vector<32x128xf32>
    %115 = arith.addf %110, %114 : vector<32x128xf32>
    %cst_41 = arith.constant 0.797884583 : f32
    %116 = vector.broadcast %cst_41 : f32 to vector<32x128xf32>
    %117 = arith.mulf %116, %115 : vector<32x128xf32>
    %118 = math.tanh %117 : vector<32x128xf32>
    %cst_42 = arith.constant 1.000000e+00 : f32
    %119 = vector.broadcast %cst_42 : f32 to vector<32x128xf32>
    %120 = arith.addf %119, %118 : vector<32x128xf32>
    %cst_43 = arith.constant 5.000000e-01 : f32
    %121 = vector.broadcast %cst_43 : f32 to vector<32x128xf32>
    %122 = arith.mulf %121, %120 : vector<32x128xf32>
    %123 = arith.mulf %110, %122 : vector<32x128xf32>
    %124 = arith.truncf %123 : vector<32x128xf32> to vector<32x128xbf16>
    %c0_44 = arith.constant 0 : index
    %c0_45 = arith.constant 0 : index
    %c0_46 = arith.constant 0 : index
    %125 = vector.load %arg15[%c0_44, %c0_45, %c0_46] : memref<1x128x32xbf16, #tpu.memory_space<vmem>>, vector<1x128x32xbf16>
    %126 = vector.shape_cast %125 : vector<1x128x32xbf16> to vector<128x32xbf16>
    %cst_47 = arith.constant dense<0.000000e+00> : vector<32x32xf32>
    %127 = tpu.matmul %124, %126, %cst_47 {dimension_numbers = #tpu.dot_dimension_numbers<[1], [0], [0], [1], [0, 0, 1, 1], [], []>} : vector<32x128xbf16>, vector<128x32xbf16>, vector<32x32xf32> -> vector<32x32xf32>
    %128 = vector.extract_strided_slice %11 {offsets = [3, 0], sizes = [1, 32], strides = [1, 1]} : vector<6x32xf32> to vector<1x32xf32>
    %129 = vector.broadcast %128 : vector<1x32xf32> to vector<32x32xf32>
    %130 = arith.addf %127, %129 : vector<32x32xf32>
    %131 = arith.addf %130, %102 : vector<32x32xf32>
    %132 = vector.extract_strided_slice %11 {offsets = [4, 0], sizes = [1, 32], strides = [1, 1]} : vector<6x32xf32> to vector<1x32xf32>
    %133 = vector.extract_strided_slice %11 {offsets = [5, 0], sizes = [1, 32], strides = [1, 1]} : vector<6x32xf32> to vector<1x32xf32>
    %cst_48 = arith.constant dense<0.000000e+00> : vector<32xf32>
    %134 = vector.multi_reduction <add>, %131, %cst_48 [1] : vector<32x32xf32> to vector<32xf32>
    %135 = vector.shape_cast %134 : vector<32xf32> to vector<32x1xf32>
    %cst_49 = arith.constant 3.200000e+01 : f32
    %136 = vector.broadcast %cst_49 : f32 to vector<32x1xf32>
    %137 = arith.divf %135, %136 : vector<32x1xf32>
    %138 = vector.broadcast %137 : vector<32x1xf32> to vector<32x32xf32>
    %139 = arith.subf %131, %138 : vector<32x32xf32>
    %140 = arith.mulf %139, %139 : vector<32x32xf32>
    %cst_50 = arith.constant dense<0.000000e+00> : vector<32xf32>
    %141 = vector.multi_reduction <add>, %140, %cst_50 [1] : vector<32x32xf32> to vector<32xf32>
    %142 = vector.shape_cast %141 : vector<32xf32> to vector<32x1xf32>
    %cst_51 = arith.constant 3.200000e+01 : f32
    %143 = vector.broadcast %cst_51 : f32 to vector<32x1xf32>
    %144 = arith.divf %142, %143 : vector<32x1xf32>
    %145 = vector.broadcast %137 : vector<32x1xf32> to vector<32x32xf32>
    %146 = arith.subf %131, %145 : vector<32x32xf32>
    %cst_52 = arith.constant 9.99999974E-6 : f32
    %147 = vector.broadcast %cst_52 : f32 to vector<32x1xf32>
    %148 = arith.addf %144, %147 : vector<32x1xf32>
    %149 = math.rsqrt %148 : vector<32x1xf32>
    %150 = vector.broadcast %149 : vector<32x1xf32> to vector<32x32xf32>
    %151 = arith.mulf %146, %150 : vector<32x32xf32>
    %152 = vector.broadcast %132 : vector<1x32xf32> to vector<32x32xf32>
    %153 = arith.mulf %151, %152 : vector<32x32xf32>
    %154 = vector.broadcast %133 : vector<1x32xf32> to vector<32x32xf32>
    %155 = arith.addf %153, %154 : vector<32x32xf32>
    %c0_53 = arith.constant 0 : index
    %c0_54 = arith.constant 0 : index
    %156 = vector.load %arg20[%c0_53, %c0_54] : memref<32x32xf32, #tpu.memory_space<vmem>>, vector<32x32xf32>
    tpu.vector_store %arg20[%c0_53, %c0_54], %155 {strides = array<i32>} : memref<32x32xf32, #tpu.memory_space<vmem>>, vector<32x32xf32>,
    %c3_i32 = arith.constant 3 : i32
    %157 = arith.cmpi eq, %arg0, %c3_i32 : i32
    %158 = arith.extui %157 : i1 to i32
    %c0_i32_55 = arith.constant 0 : i32
    %159 = arith.cmpi ne, %158, %c0_i32_55 : i32
    scf.if %159 {
      %160 = tpu.iota {dimensions = array<i32: 0>} : vector<4x32xi32>
      %161 = tpu.iota {dimensions = array<i32: 1>} : vector<4x32xi32>
      %c8_i32 = arith.constant 8 : i32
      %162 = vector.broadcast %c8_i32 : i32 to vector<4x32xi32>
      %163 = arith.muli %160, %162 : vector<4x32xi32>
      %164 = arith.cmpi eq, %161, %163 : vector<4x32xi32>
      %165 = arith.extui %164 : vector<4x32xi1> to vector<4x32xi32>
      %166 = arith.sitofp %165 : vector<4x32xi32> to vector<4x32xf32>
      %cst_56 = arith.constant dense<0.000000e+00> : vector<4x32xf32>
      %167 = tpu.matmul %166, %155, %cst_56 {dimension_numbers = #tpu.dot_dimension_numbers<[1], [0], [0], [1], [0, 0, 1, 1], [], []>} : vector<4x32xf32>, vector<32x32xf32>, vector<4x32xf32> -> vector<4x32xf32>
      %c0_57 = arith.constant 0 : index
      %c0_58 = arith.constant 0 : index
      %168 = vector.load %arg3[%c0_57, %c0_58] : memref<4x4xf32, #tpu.memory_space<vmem>>, vector<4x4xf32>
      %c0_59 = arith.constant 0 : index
      %c0_60 = arith.constant 0 : index
      %169 = vector.load %arg6[%c0_59, %c0_60] : memref<32x16xf32, #tpu.memory_space<vmem>>, vector<32x16xf32>
      %cst_61 = arith.constant dense<0.000000e+00> : vector<4x16xf32>
      %170 = tpu.matmul %167, %169, %cst_61 {dimension_numbers = #tpu.dot_dimension_numbers<[1], [0], [0], [1], [0, 0, 1, 1], [], []>} : vector<4x32xf32>, vector<32x16xf32>, vector<4x16xf32> -> vector<4x16xf32>
      %c0_62 = arith.constant 0 : index
      %c0_63 = arith.constant 0 : index
      %171 = vector.load %arg7[%c0_62, %c0_63] : memref<1x16xf32, #tpu.memory_space<vmem>>, vector<1x16xf32>
      %172 = vector.broadcast %171 : vector<1x16xf32> to vector<4x16xf32>
      %173 = arith.mulf %170, %172 : vector<4x16xf32>
      %cst_64 = arith.constant dense<0.000000e+00> : vector<4xf32>
      %174 = vector.multi_reduction <add>, %173, %cst_64 [1] : vector<4x16xf32> to vector<4xf32>
      %175 = vector.shape_cast %174 : vector<4xf32> to vector<4x1xf32>
      %c0_65 = arith.constant 0 : index
      %c0_66 = arith.constant 0 : index
      %176 = vector.load %arg8[%c0_65, %c0_66] : memref<1x16xf32, #tpu.memory_space<vmem>>, vector<1x16xf32>
      %177 = vector.broadcast %176 : vector<1x16xf32> to vector<4x16xf32>
      %178 = arith.mulf %170, %177 : vector<4x16xf32>
      %cst_67 = arith.constant dense<0.000000e+00> : vector<4xf32>
      %179 = vector.multi_reduction <add>, %178, %cst_67 [1] : vector<4x16xf32> to vector<4xf32>
      %180 = vector.shape_cast %179 : vector<4xf32> to vector<4x1xf32>
      %181 = tpu.transpose %175, [1, 0] : vector<4x1xf32> -> vector<1x4xf32>
      %182 = vector.broadcast %180 : vector<4x1xf32> to vector<4x4xf32>
      %183 = vector.broadcast %181 : vector<1x4xf32> to vector<4x4xf32>
      %184 = arith.addf %182, %183 : vector<4x4xf32>
      %cst_68 = arith.constant 0.000000e+00 : f32
      %185 = vector.broadcast %cst_68 : f32 to vector<4x4xf32>
      %186 = arith.cmpf ogt, %184, %185 : vector<4x4xf32>
      %cst_69 = arith.constant 2.000000e-01 : f32
      %187 = vector.broadcast %cst_69 : f32 to vector<4x4xf32>
      %188 = arith.mulf %187, %184 : vector<4x4xf32>
      %189 = arith.select %186, %184, %188 : vector<4x4xi1>, vector<4x4xf32>
      %cst_70 = arith.constant 0.000000e+00 : f32
      %190 = vector.broadcast %cst_70 : f32 to vector<4x4xf32>
      %191 = arith.cmpf ogt, %168, %190 : vector<4x4xf32>
      %cst_71 = arith.constant -1.000000e+09 : f32
      %192 = vector.broadcast %cst_71 : f32 to vector<4x4xf32>
      %193 = arith.select %191, %189, %192 : vector<4x4xi1>, vector<4x4xf32>
      %cst_72 = arith.constant dense<0xFF800000> : vector<4xf32>
      %194 = vector.multi_reduction <maximumf>, %193, %cst_72 [1] : vector<4x4xf32> to vector<4xf32>
      %195 = vector.shape_cast %194 : vector<4xf32> to vector<4x1xf32>
      %196 = vector.broadcast %195 : vector<4x1xf32> to vector<4x4xf32>
      %197 = arith.subf %193, %196 : vector<4x4xf32>
      %198 = math.exp %197 : vector<4x4xf32>
      %cst_73 = arith.constant dense<0.000000e+00> : vector<4xf32>
      %199 = vector.multi_reduction <add>, %198, %cst_73 [1] : vector<4x4xf32> to vector<4xf32>
      %200 = vector.shape_cast %199 : vector<4xf32> to vector<4x1xf32>
      %201 = vector.broadcast %200 : vector<4x1xf32> to vector<4x4xf32>
      %202 = arith.divf %198, %201 : vector<4x4xf32>
      %cst_74 = arith.constant 0.000000e+00 : f32
      %203 = vector.broadcast %cst_74 : f32 to vector<4x4xf32>
      %204 = arith.cmpf ogt, %168, %203 : vector<4x4xf32>
      %cst_75 = arith.constant 0.000000e+00 : f32
      %205 = vector.broadcast %cst_75 : f32 to vector<4x4xf32>
      %206 = arith.select %204, %202, %205 : vector<4x4xi1>, vector<4x4xf32>
      %cst_76 = arith.constant dense<0.000000e+00> : vector<4x16xf32>
      %207 = tpu.matmul %206, %170, %cst_76 {dimension_numbers = #tpu.dot_dimension_numbers<[1], [0], [0], [1], [0, 0, 1, 1], [], []>} : vector<4x4xf32>, vector<4x16xf32>, vector<4x16xf32> -> vector<4x16xf32>
      %c0_77 = arith.constant 0 : index
      %c0_78 = arith.constant 0 : index
      %208 = vector.load %arg9[%c0_77, %c0_78] : memref<1x16xf32, #tpu.memory_space<vmem>>, vector<1x16xf32>
      %209 = vector.broadcast %208 : vector<1x16xf32> to vector<4x16xf32>
      %210 = arith.addf %207, %209 : vector<4x16xf32>
      %c0_79 = arith.constant 0 : index
      %c0_80 = arith.constant 0 : index
      %211 = vector.load %arg10[%c0_79, %c0_80] : memref<16x3xf32, #tpu.memory_space<vmem>>, vector<16x3xf32>
      %cst_81 = arith.constant dense<0.000000e+00> : vector<4x3xf32>
      %212 = tpu.matmul %210, %211, %cst_81 {dimension_numbers = #tpu.dot_dimension_numbers<[1], [0], [0], [1], [0, 0, 1, 1], [], []>} : vector<4x16xf32>, vector<16x3xf32>, vector<4x3xf32> -> vector<4x3xf32>
      %c0_82 = arith.constant 0 : index
      %c0_83 = arith.constant 0 : index
      %213 = vector.load %arg11[%c0_82, %c0_83] : memref<1x3xf32, #tpu.memory_space<vmem>>, vector<1x3xf32>
      %214 = vector.broadcast %213 : vector<1x3xf32> to vector<4x3xf32>
      %215 = arith.addf %212, %214 : vector<4x3xf32>
      %cst_84 = arith.constant 0.000000e+00 : f32
      %216 = vector.broadcast %cst_84 : f32 to vector<4x121xf32>
      %217 = tpu.concatenate %215, %206, %216 in 1 : vector<4x3xf32>, vector<4x4xf32>, vector<4x121xf32> -> vector<4x128xf32>
      %c0_85 = arith.constant 0 : index
      %c0_86 = arith.constant 0 : index
      %218 = vector.load %arg19[%c0_85, %c0_86] : memref<4x128xf32, #tpu.memory_space<vmem>>, vector<4x128xf32>
      tpu.vector_store %arg19[%c0_85, %c0_86], %217 {strides = array<i32>} : memref<4x128xf32, #tpu.memory_space<vmem>>, vector<4x128xf32>,
    } else {
    }
    return
  }
  func.func @transform_0(%arg0: i32) -> (i32, i32) {
    %c0_i32 = arith.constant 0 : i32
    %c0_i32_0 = arith.constant 0 : i32
    %c0_i32_1 = arith.constant 0 : i32
    return %c0_i32, %c0_i32_0 : i32, i32
  }
  func.func @transform_1(%arg0: i32) -> (i32, i32) {
    %c0_i32 = arith.constant 0 : i32
    %c0_i32_0 = arith.constant 0 : i32
    %c0_i32_1 = arith.constant 0 : i32
    return %c0_i32, %c0_i32_0 : i32, i32
  }
  func.func @transform_2(%arg0: i32) -> (i32, i32) {
    %c0_i32 = arith.constant 0 : i32
    %c0_i32_0 = arith.constant 0 : i32
    %c0_i32_1 = arith.constant 0 : i32
    return %c0_i32, %c0_i32_0 : i32, i32
  }
  func.func @transform_3(%arg0: i32) -> (i32, i32) {
    %c0_i32 = arith.constant 0 : i32
    %c0_i32_0 = arith.constant 0 : i32
    %c0_i32_1 = arith.constant 0 : i32
    return %c0_i32, %c0_i32_0 : i32, i32
  }
  func.func @transform_4(%arg0: i32) -> (i32, i32) {
    %c0_i32 = arith.constant 0 : i32
    %c0_i32_0 = arith.constant 0 : i32
    %c0_i32_1 = arith.constant 0 : i32
    return %c0_i32, %c0_i32_0 : i32, i32
  }
  func.func @transform_5(%arg0: i32) -> (i32, i32) {
    %c0_i32 = arith.constant 0 : i32
    %c0_i32_0 = arith.constant 0 : i32
    %c0_i32_1 = arith.constant 0 : i32
    return %c0_i32, %c0_i32_0 : i32, i32
  }
  func.func @transform_6(%arg0: i32) -> (i32, i32) {
    %c0_i32 = arith.constant 0 : i32
    %c0_i32_0 = arith.constant 0 : i32
    %c0_i32_1 = arith.constant 0 : i32
    return %c0_i32, %c0_i32_0 : i32, i32
  }
  func.func @transform_7(%arg0: i32) -> (i32, i32) {
    %c0_i32 = arith.constant 0 : i32
    %c0_i32_0 = arith.constant 0 : i32
    %c0_i32_1 = arith.constant 0 : i32
    return %c0_i32, %c0_i32_0 : i32, i32
  }
  func.func @transform_8(%arg0: i32) -> (i32, i32) {
    %c0_i32 = arith.constant 0 : i32
    %c0_i32_0 = arith.constant 0 : i32
    %c0_i32_1 = arith.constant 0 : i32
    return %c0_i32, %c0_i32_0 : i32, i32
  }
  func.func @transform_9(%arg0: i32) -> (i32, i32) {
    %c0_i32 = arith.constant 0 : i32
    %c0_i32_0 = arith.constant 0 : i32
    %c0_i32_1 = arith.constant 0 : i32
    return %c0_i32, %c0_i32_0 : i32, i32
  }
  func.func @transform_10(%arg0: i32) -> (i32, i32) {
    %c0_i32 = arith.constant 0 : i32
    %c0_i32_0 = arith.constant 0 : i32
    %c0_i32_1 = arith.constant 0 : i32
    return %c0_i32, %c0_i32_0 : i32, i32
  }
  func.func @transform_11(%arg0: i32) -> (i32, i32, i32) {
    %c0_i32 = arith.constant 0 : i32
    %c0_i32_0 = arith.constant 0 : i32
    %c0_i32_1 = arith.constant 0 : i32
    return %arg0, %c0_i32, %c0_i32_0 : i32, i32, i32
  }
  func.func @transform_12(%arg0: i32) -> (i32, i32, i32) {
    %c0_i32 = arith.constant 0 : i32
    %c0_i32_0 = arith.constant 0 : i32
    %c0_i32_1 = arith.constant 0 : i32
    return %arg0, %c0_i32, %c0_i32_0 : i32, i32, i32
  }
  func.func @transform_13(%arg0: i32) -> (i32, i32, i32) {
    %c0_i32 = arith.constant 0 : i32
    %c0_i32_0 = arith.constant 0 : i32
    %c0_i32_1 = arith.constant 0 : i32
    return %arg0, %c0_i32, %c0_i32_0 : i32, i32, i32
  }
  func.func @transform_14(%arg0: i32) -> (i32, i32, i32) {
    %c0_i32 = arith.constant 0 : i32
    %c0_i32_0 = arith.constant 0 : i32
    %c0_i32_1 = arith.constant 0 : i32
    return %arg0, %c0_i32, %c0_i32_0 : i32, i32, i32
  }
  func.func @transform_15(%arg0: i32) -> (i32, i32, i32) {
    %c0_i32 = arith.constant 0 : i32
    %c0_i32_0 = arith.constant 0 : i32
    %c0_i32_1 = arith.constant 0 : i32
    return %arg0, %c0_i32, %c0_i32_0 : i32, i32, i32
  }
  func.func @transform_16(%arg0: i32) -> (i32, i32, i32) {
    %c0_i32 = arith.constant 0 : i32
    %c0_i32_0 = arith.constant 0 : i32
    %c0_i32_1 = arith.constant 0 : i32
    return %arg0, %c0_i32, %c0_i32_0 : i32, i32, i32
  }
  func.func @transform_17(%arg0: i32) -> (i32, i32, i32) {
    %c0_i32 = arith.constant 0 : i32
    %c0_i32_0 = arith.constant 0 : i32
    %c0_i32_1 = arith.constant 0 : i32
    return %arg0, %c0_i32, %c0_i32_0 : i32, i32, i32
  }
  func.func @transform_18(%arg0: i32) -> (i32, i32) {
    %c0_i32 = arith.constant 0 : i32
    %c0_i32_0 = arith.constant 0 : i32
    %c0_i32_1 = arith.constant 0 : i32
    return %c0_i32, %c0_i32_0 : i32, i32
  }
}

</mosaic_0001>

<bundles_post_ra>
// kernel: tpu_custom_call.1
= control target key start
LH: loop header
LB: loop body
LE: loop exit
PB: predicated region body
PF: predicated region fallthrough
CT: control target
= control target key end

     0   :  { %s3838_s0 = inlined_call_operand.vmem [shape: f32[32,32], index: 0, kind: input, shape index: {}]   ;;  %s3839_s1 = inlined_call_operand.vmem [shape: f32[4,8], index: 1, kind: input, shape index: {}]   ;;  %s3840_s2 = inlined_call_operand.vmem [shape: f32[4,4], index: 2, kind: input, shape index: {}]   ;;  %s3841_s3 = inlined_call_operand.vmem [shape: f32[1,32], index: 3, kind: input, shape index: {}]   ;;  %s3842_s4 = inlined_call_operand.vmem [shape: f32[1,32], index: 4, kind: input, shape index: {}]   ;;  %s3843_s5 = inlined_call_operand.vmem [shape: f32[32,16], index: 5, kind: input, shape index: {}]   ;;  %s3844_s6 = inlined_call_operand.vmem [shape: f32[1,16], index: 6, kind: input, shape index: {}]   ;;  %s3845_s7 = inlined_call_operand.vmem [shape: f32[1,16], index: 7, kind: input, shape index: {}]   ;;  %s3846_s8 = inlined_call_operand.vmem [shape: f32[1,16], index: 8, kind: input, shape index: {}]   ;;  %s3847_s9 = inlined_call_operand.vmem [shape: f32[16,3], index: 9, kind: input, shape index: {}]   ;;  %s3848_s10 = inlined_call_operand.vmem [shape: f32[1,3], index: 10, kind: input, shape index: {}]   ;;  %s3849_s11 = inlined_call_operand.vmem [shape: bf16[4,32,96], index: 11, kind: input, shape index: {}]   ;;  %s3850_s12 = inlined_call_operand.vmem [shape: bf16[4,32,32], index: 12, kind: input, shape index: {}]   ;;  %s3851_s13 = inlined_call_operand.vmem [shape: bf16[4,32,128], index: 13, kind: input, shape index: {}]   ;;  %s3852_s14 = inlined_call_operand.vmem [shape: bf16[4,128,32], index: 14, kind: input, shape index: {}]   ;;  %s3853_s15 = inlined_call_operand.vmem [shape: f32[4,1,96], index: 15, kind: input, shape index: {}]   ;;  %s3854_s16 = inlined_call_operand.vmem [shape: f32[4,1,128], index: 16, kind: input, shape index: {}]   ;;  %s3855_s17 = inlined_call_operand.vmem [shape: f32[4,6,32], index: 17, kind: input, shape index: {}]   ;;  %s3856_s18 = inlined_call_operand.hbm [shape: f32[4,128], index: 18, kind: output, shape index: {}]  }
   0x1   :  { %3860 = sst [smem:[#allocation7_spill]] %s3838_s0 }
   0x2   :  { %3861 = sst [smem:[#allocation8_spill]] %s3839_s1 }
   0x3   :  { %3862 = sst [smem:[#allocation9_spill]] %s3840_s2 }
   0x4   :  { %3863 = sst [smem:[#allocation10_spill]] %s3846_s8 }
   0x5   :  { %3864 = sst [smem:[#allocation11_spill]] %s3847_s9 }
   0x6   :  { %3865 = sst [smem:[#allocation12_spill]] %s3848_s10 }
   0x7   :  { %3866 = sst [smem:[#allocation13_spill]] %s3849_s11 }
   0x8   :  { %3867 = sst [smem:[#allocation14_spill]] %s3850_s12 }
   0x9   :  { %3868 = sst [smem:[#allocation15_spill]] %s3856_s18 }
   0xa   :  { %23 = vsyncpa [#allocation4], 0  ;;  %s3396_s27 = smov 0  }
   0xb LB: > { %3869 = sst [smem:[#allocation6_spill]] %s3286_s27  ;;  %s3402_s28 = sadd.s32 4294967295, %s3286_s27   ;;  %s3286_s27 = sphi %s3396_s27, %s29_s27  }
   0xc   : > { %p2804_p0 = scmp.ge.s32.totalorder %s3286_s27, 1  ;;  %p563_p1 = scmp.lt.s32.totalorder %s3286_s27, 5 }
   0xe   : > { %p564_p2 = pnand %p2804_p0, %p563_p1 }
   0xf   : > { %p637_p3 = scmp.lt.s32.totalorder (!%p564_p2), %s3402_s28, 3  ;;  %s3870_s11 = sld [smem:[#allocation13_spill]] (!%p564_p2) }
  0x10   : > { %567 = sbr.rel (%p564_p2) target bundleno = 4756 (0x1294), region = 92  ;;  %s3871_s12 = sld [smem:[#allocation14_spill]] (!%p564_p2) }
  0x11   : > { %p2814_p4 = scmp.ne.s32.totalorder (!%p564_p2), %s3402_s28, 0 }
  0x15   : > { %s3408_s29 = scalar_select %p637_p3, %s3402_s28, 3 }
  0x17   : > { %s2878_s30 = sshll.u32 %s3408_s29, 4  ;;  %s2881_s0 = sshll.u32 %s3408_s29, 6 }
  0x18   : > { %s3415_s20 = scalar_lea.vmem %s3870_s11, %s2878_s30  ;;  %s3420_s2 = scalar_lea.vmem %s3871_s12, %s2878_s30 }
  0x19   : > { %s3425_s25 = scalar_lea.vmem %s3851_s13, %s2878_s30  ;;  %s3430_s18 = scalar_lea.vmem %s3852_s14, %s2881_s0 }
  0x1a   : > { %s659_s19 = scalar_lea.vmem %s3853_s15, %s3408_s29  ;;  %s662_s21 = scalar_lea.vmem %s3854_s16, %s3408_s29 }
  0x1b   : > { %s2813_s22 = sshll.u32 %s3408_s29, 3  ;;  %671 = sbr.rel (%p2814_p4) target bundleno = 352 (0x160), region = 96 }
  0x1c   : > { %s3444_s23 = scalar_lea.vmem %s3855_s17, %s2813_s22  ;;  %s3872_s0 = sld [smem:[#allocation7_spill]] (!%p2814_p4) }
  0x20   : > { %vm678_vm0 = vcmask 261120   ;;  %v2815_v41 = vld [vmem:[%s3841_s3] ss:$0 sm:$0xff] }
  0x21   : > { %v2816_v43 = vld [vmem:[%s3842_s4] ss:$0 sm:$0xff] }
  0x22   : > { %v672_v0 = vld [vmem:[%s3872_s0] sm:$0xff]  ;;  %v674_v1 = vld [vmem:[%s3872_s0 + $0x10] sm:$0xff]  ;;  %v673_v2 = vld [vmem:[%s3872_s0 + $0x8] sm:$0xff] }
  0x23   : > { %v679_v3 = vsel %vm678_vm0, %v672_v0, 0.0  ;;  %v685_v4 = vsel %vm678_vm0, %v674_v1, 0.0  ;;  %v675_v5 = vld [vmem:[%s3872_s0 + $0x18] sm:$0xff]  ;;  %v682_v6 = vsel %vm678_vm0, %v673_v2, 0.0 }
  0x24   : > { %680 = vadd.xlane.f32.xlu0 %v679_v3  ;;  %686 = vadd.xlane.f32.xlu1 %v685_v4  ;;  %v688_v7 = vsel %vm678_vm0, %v675_v5, 0.0 }
  0x28   : > { %683 = vadd.xlane.f32.xlu0 %v682_v6  ;;  %689 = vadd.xlane.f32.xlu1 %v688_v7 }
  0xad   : > { %v681_v8 = vpop.xlane.xlu0 %680  ;;  %v687_v9 = vpop.xlane.xlu1 %686 }
  0xae   : > { %v692_v10 = vmul.f32 0.03125, %v681_v8  ;;  %v694_v11 = vmul.f32 0.03125, %v687_v9 }
  0xb0   : > { %v696_v12 = vsub.f32 %v672_v0, %v692_v10  ;;  %v698_v13 = vsub.f32 %v674_v1, %v694_v11 }
  0xb1   : > { %v684_v14 = vpop.xlane.xlu0 %683  ;;  %v690_v15 = vpop.xlane.xlu1 %689 }
  0xb2   : > { %v693_v16 = vmul.f32 0.03125, %v684_v14  ;;  %v695_v17 = vmul.f32 0.03125, %v690_v15  ;;  %v700_v18 = vmul.f32 %v696_v12, %v696_v12  ;;  %v702_v19 = vmul.f32 %v698_v13, %v698_v13 }
  0xb4   : > { %v697_v20 = vsub.f32 %v673_v2, %v693_v16  ;;  %v699_v21 = vsub.f32 %v675_v5, %v695_v17  ;;  %v704_v22 = vsel %vm678_vm0, %v700_v18, 0.0  ;;  %v710_v23 = vsel %vm678_vm0, %v702_v19, 0.0 }
  0xb5   : > { %705 = vadd.xlane.f32.xlu0 %v704_v22 }
  0xb6   : > { %v701_v24 = vmul.f32 %v697_v20, %v697_v20  ;;  %v703_v25 = vmul.f32 %v699_v21, %v699_v21 }
  0xb8   : > { %v707_v26 = vsel %vm678_vm0, %v701_v24, 0.0  ;;  %v713_v27 = vsel %vm678_vm0, %v703_v25, 0.0 }
  0xb9   : > { %711 = vadd.xlane.f32.xlu0 %v710_v23  ;;  %708 = vadd.xlane.f32.xlu1 %v707_v26 }
  0xbd   : > { %714 = vadd.xlane.f32.xlu1 %v713_v27 }
 0x13e   : > { %v706_v28 = vpop.xlane.xlu0 %705 }
 0x13f   : > { %v716_v29 = vmul.f32 0.03125, %v706_v28 }
 0x141   : > { %v720_v30 = vadd.f32 1e-05, %v716_v29 }
 0x142   : > { %v709_v31 = vpop.xlane.xlu1 %708  ;;  %v712_v32 = vpop.xlane.xlu0 %711 }
 0x143   : > { %3160 = vrsqrt.f32 %v720_v30  ;;  %v717_v33 = vmul.f32 0.03125, %v709_v31  ;;  %v718_v34 = vmul.f32 0.03125, %v712_v32 }
 0x145   : > { %v721_v35 = vadd.f32 1e-05, %v717_v33  ;;  %v722_v36 = vadd.f32 1e-05, %v718_v34 }
 0x146   : > { %v715_v37 = vpop.xlane.xlu1 %714 }
 0x147   : > { %3162 = vrsqrt.f32 %v721_v35  ;;  %v719_v38 = vmul.f32 0.03125, %v715_v37 }
 0x148   : > { %3164 = vrsqrt.f32 %v722_v36 }
 0x149   : > { %v723_v39 = vadd.f32 1e-05, %v719_v38 }
 0x14b   : > { %3166 = vrsqrt.f32 %v723_v39 }
 0x150   : > { %v3161_v40 = vpop.eup %3160 }
 0x151   : > { %v728_v42 = vmul.f32 %v3161_v40, %v696_v12 }
 0x153   : > { %v738_v44 = vmul.f32 %v2815_v41, %v728_v42 }
 0x154   : > { %v3163_v45 = vpop.eup %3162 }
 0x155   : > { %v3165_v46 = vpop.eup %3164  ;;  %v748_v47 = vadd.f32 %v2816_v43, %v738_v44  ;;  %v729_v48 = vmul.f32 %v3163_v45, %v697_v20 }
 0x156   : > { %v730_v49 = vmul.f32 %v3165_v46, %v698_v13 }
 0x157   : > { %752 = vst.msk [vmem:[#allocation2] sm:$0xff] %vm678_vm0, %v748_v47  ;;  %v739_v50 = vmul.f32 %v2815_v41, %v729_v48 }
 0x158   : > { %v3167_v51 = vpop.eup %3166  ;;  %v740_v52 = vmul.f32 %v2815_v41, %v730_v49 }
 0x159   : > { %v749_v53 = vadd.f32 %v2816_v43, %v739_v50  ;;  %v731_v54 = vmul.f32 %v3167_v51, %v699_v21 }
 0x15a   : > { %v750_v55 = vadd.f32 %v2816_v43, %v740_v52 }
 0x15b   : > { %753 = vst.msk [vmem:[#allocation2 + $0x8] sm:$0xff] %vm678_vm0, %v749_v53  ;;  %v741_v56 = vmul.f32 %v2815_v41, %v731_v54 }
 0x15c   : > { %754 = vst.msk [vmem:[#allocation2 + $0x10] sm:$0xff] %vm678_vm0, %v750_v55 }
 0x15d   : > { %v751_v57 = vadd.f32 %v2816_v43, %v741_v56 }
 0x15f   : > { %755 = vst.msk [vmem:[#allocation2 + $0x18] sm:$0xff] %vm678_vm0, %v751_v57 }
 0x160 PF: > { %v3178_v58 = vld [vmem:[%s3415_s20 + $0x8] sm:$0xff]   ;;  %v3179_v59 = vld [vmem:[%s3415_s20] sm:$0xff]   ;;  %vm814_vm1 = vcmask 261120   ;;  %v3288_v2 = vmov 0.0   ;;  %vm3289_vm2 = vmmov 0   ;;  %s3290_s8 = smov 96   ;;  %v767_v34 = vlaneseq }
 0x161   : > { %2959 = vmatprep.subr.bf16.mxu0 %v3178_v58  ;;  %v3479_v60 = vld [vmem:[#allocation2] sm:$0xff]  ;;  %2979 = vmatprep.subr.bf16.mxu1 %v3288_v2  ;;  %vm917_vm3 = vcmask 130048   ;;  %v3291_v32 = vmov 1966171168   ;;  %s3873_s11 = sld [smem:[#allocation8_spill]]  ;;  %vm1111_vm4 = vcmask 64512  }
 0x162   : > { %v3481_v61 = vld [vmem:[#allocation2 + $0x8] sm:$0xff]  ;;  %2960 = vmatpush3.bf16.msra.mxu0 %v3178_v58  ;;  %v2817_v3 = vld [vmem:[%s659_s19] ss:$0 sm:$0xff]  ;;  %2981 = vmatprep.mubr.msk.bf16.mxu1 %vm3289_vm2, %v3288_v2  ;;  %v765_v33 = vunpack.c.l.s4 %v3291_v32  ;;  %v3552_v38 = vshrl.u32 %v767_v34, 7  ;;  %s3292_s24 = smov 64   ;;  %vm1165_vm5 = vcmask 1043456  }
 0x163   : > { %v3483_v62 = vld [vmem:[#allocation2 + $0x10] sm:$0xff]  ;;  %v789_v63 = vpack.c.bf16 %v3481_v61, %v3479_v60  ;;  %2961 = vmatprep.subr.bf16.mxu0 %v3179_v59  ;;  %s3293_s9 = smov 80   ;;  %s3294_s12 = smov 112  }
 0x164   : > { %v766_v37 = vunpack.c.0.s8 %v765_v33  ;;  %v3556_v44 = vsub.s32 0, %v3552_v38  ;;  %s3295_s26 = smov 48   ;;  %s3296_s1 = smov 16  }
 0x165   : > { %2963 = vmatprep.mubr.msk.bf16.mxu0 %vm814_vm1, %v789_v63  ;;  %p2863_p5 = scmp.ne.s32.totalorder %s3402_s28, 3 }
 0x166   : > { %v3487_v0 = vld [vmem:[#allocation2 + $0x18] sm:$0xff]  ;;  %2962 = vmatpush3.bf16.msra.mxu0 %v3179_v59  ;;  %v769_v40 = vsub.s32 %v766_v37, %v3552_v38  ;;  %s3876_s22 = sld [smem:[#allocation10_spill]] (!%p2863_p5) }
 0x167   : > { %v790_v1 = vpack.c.bf16 %v3487_v0, %v3483_v62  ;;  %2967 = vmatprep.subr.bf16.mxu0 %v3288_v2  ;;  %v760_v35 = vld [vmem:[%s3873_s11] sm:$0xf]  ;;  %s3877_s30 = sld [smem:[#allocation12_spill]] (!%p2863_p5) }
 0x168   : > { %v761_v36 = vsub.f32 1.0, %v760_v35 }
 0x169   : > { %2964 = vmatmul.mubr.msk.bf16.vlgmr.msra.gmra.mxu0 %vm814_vm1, %v790_v1 }
 0x16a   : > { %2969 = vmatprep.mubr.msk.bf16.mxu0 %vm3289_vm2, %v3288_v2  ;;  %v762_v39 = vmul.f32 -10000.0, %v761_v36 }
 0x16c   : > { %v770_v41 = vrot.slane %v762_v39, %v769_v40 }
 0x16e   : > { %v778_v42 = vrot.slane %v770_v41, %v769_v40  ;;  %v771_v46 = vcombine.high %v770_v41, %v770_v41 }
 0x170   : > { %v786_v43 = vcombine.high %v778_v42, %v778_v42  ;;  %v3559_v45 = vrot.slane %v778_v42, %v3556_v44  ;;  %v785_v52 = vrot.slane %v771_v46, %v769_v40 }
 0x172   : > { %v3562_v48 = vrot.slane %v786_v43, %v3556_v44  ;;  %v3568_v59 = vrot.slane %v785_v52, %v3556_v44 }
 0x229   : > { %v2965_v4 = vpop.f32.mrf.mxu0 }
 0x22a   : > { %v864_v5 = vadd.f32 %v2965_v4, %v2817_v3 }
 0x22b   : > { %v855_v6 = vpop.f32.mrf.mxu0 }
 0x22c   : > { %v3504_v7 = vpack.c.bf16 %v864_v5, %v864_v5  ;;  %v856_v8 = vadd.f32 %v2817_v3, %v855_v6  ;;  %v872_v19 = vmul.f32 0.25, %v864_v5  ;;  %v787_v5 = vcombine.high %v785_v52, %v785_v52 }
 0x22d   : > { %v2966_v9 = vpop.f32.mrf.mxu0 }
 0x22e   : > { %v3506_v10 = vpack.c.bf16 %v856_v8, %v856_v8  ;;  %v867_v11 = vadd.f32 %v2966_v9, %v2817_v3  ;;  %1014 = vrot.lane.b32.xlu1 %v3504_v7, %s3290_s8  ;;  %v870_v21 = vmul.f32 0.25, %v856_v8  ;;  %v3520_v22 = vpack.c.bf16 %v872_v19, %v872_v19 }
 0x22f   : > { %v858_v12 = vpop.f32.mrf.mxu0 }
 0x230   : > { %v3509_v13 = vpack.c.bf16 %v867_v11, %v867_v11  ;;  %v859_v14 = vadd.f32 %v2817_v3, %v858_v12  ;;  %915 = vrot.lane.b32.xlu0 %v3506_v10, %s3290_s8  ;;  %v3522_v24 = vpack.c.bf16 %v870_v21, %v870_v21  ;;  %v873_v30 = vmul.f32 0.25, %v867_v11 }
 0x231   : > { %v3574_v11 = vrot.slane %v787_v5, %v3556_v44 }
 0x232   : > { %v3512_v15 = vpack.c.bf16 %v859_v14, %v859_v14  ;;  %1063 = vrot.lane.b32.xlu1 %v3509_v13, %s3290_s8  ;;  %v871_v26 = vmul.f32 0.25, %v859_v14  ;;  %v3542_v31 = vpack.c.bf16 %v873_v30, %v873_v30 }
 0x234   : > { %965 = vrot.lane.b32.xlu0 %v3512_v15, %s3290_s8  ;;  %v3534_v28 = vpack.c.bf16 %v871_v26, %v871_v26 }
 0x2a0   : > { %v1015_v16 = vpop.permute.xlu1 %1014 }
 0x2a1   : > { %v1020_v17 = vsel %vm917_vm3, %v1015_v16, 0 }
 0x2a2   : > { %2980 = vmatpush3.bf16.xpose.msra.mxu1 %v1020_v17  ;;  %v916_v18 = vpop.permute.xlu0 %915 }
 0x2a3   : > { %v922_v20 = vsel %vm917_vm3, %v916_v18, 0  ;;  %2991 = vmatprep.subr.bf16.mxu1 %v3288_v2 }
 0x2a4   : > { %2968 = vmatpush3.bf16.xpose.msra.mxu0 %v922_v20  ;;  %v1064_v27 = vpop.permute.xlu1 %1063 }
 0x2a5   : > { %2973 = vmatprep.subr.bf16.mxu0 %v3288_v2  ;;  %v1069_v29 = vsel %vm917_vm3, %v1064_v27, 0 }
 0x2a6   : > { %v966_v23 = vpop.permute.xlu0 %965 }
 0x2a7   : > { %v971_v25 = vsel %vm917_vm3, %v966_v23, 0 }
 0x2a9   : > { %2982 = vmatmul.mubr.msk.bf16.vlgmr.msra.gmra.mxu1 %vm917_vm3, %v3520_v22 }
 0x2aa   : > { %2993 = vmatprep.mubr.msk.bf16.mxu1 %vm3289_vm2, %v3288_v2 }
 0x2ab   : > { %2970 = vmatmul.mubr.msk.bf16.vlgmr.msra.gmra.mxu0 %vm917_vm3, %v3522_v24 }
 0x2ac   : > { %2974 = vmatpush3.bf16.xpose.msra.mxu0 %v971_v25  ;;  %2975 = vmatprep.mubr.msk.bf16.mxu0 %vm3289_vm2, %v3288_v2 }
 0x2ad   : > { %2985 = vmatprep.subr.bf16.mxu0 %v3288_v2 }
 0x2b3   : > { %2976 = vmatmul.mubr.msk.bf16.vlgmr.msra.gmra.mxu0 %vm917_vm3, %v3534_v28 }
 0x2b4   : > { %2986 = vmatpush3.bf16.xpose.msra.mxu0 %v1069_v29  ;;  %2987 = vmatprep.mubr.msk.bf16.mxu0 %vm3289_vm2, %v3288_v2 }
 0x2b5   : > { %2997 = vmatprep.subr.bf16.mxu0 %v3288_v2 }
 0x2bb   : > { %2988 = vmatmul.mubr.msk.bf16.vlgmr.msra.gmra.mxu0 %vm917_vm3, %v3542_v31 }
 0x2bc   : > { %2999 = vmatprep.mubr.msk.bf16.mxu0 %vm3289_vm2, %v3288_v2 }
 0x369   : > { %v1056_v47 = vpop.f32.mrf.mxu1 }
 0x36a   : > { %v1057_v55 = vadd.f32 %v1056_v47, %v3562_v48 }
 0x36b   : > { %v958_v49 = vpop.f32.mrf.mxu0  ;;  %v2983_v50 = vpop.f32.mrf.mxu1 }
 0x36c   : > { %v959_v51 = vadd.f32 %v958_v49, %v3559_v45  ;;  %v1118_v1 = vsel %vm1111_vm4, %v1057_v55, -inf }
 0x36d   : > { %v2971_v53 = vpop.f32.mrf.mxu0  ;;  %v1059_v54 = vpop.f32.mrf.mxu1 }
 0x36e   : > { %v1112_v56 = vsel %vm1111_vm4, %v959_v51, -inf }
 0x36f   : > { %v2984_v57 = vpop.f32.mrf.mxu1  ;;  %1113 = vmax.xlane.f32.xlu0 %v1112_v56  ;;  %v961_v58 = vpop.f32.mrf.mxu0 }
 0x371   : > { %v2972_v63 = vpop.f32.mrf.mxu0 }
 0x373   : > { %1119 = vmax.xlane.f32.xlu0 %v1118_v1  ;;  %v1007_v3 = vpop.f32.mrf.mxu0 }
 0x374   : > { %v1008_v4 = vadd.f32 %v1007_v3, %v3568_v59 }
 0x375   : > { %v2977_v6 = vpop.f32.mrf.mxu0 }
 0x376   : > { %v1115_v8 = vsel %vm1111_vm4, %v1008_v4, -inf }
 0x377   : > { %1116 = vmax.xlane.f32.xlu1 %v1115_v8  ;;  %v1010_v9 = vpop.f32.mrf.mxu0 }
 0x379   : > { %v2978_v12 = vpop.f32.mrf.mxu0 }
 0x37b   : > { %v1105_v14 = vpop.f32.mrf.mxu0 }
 0x37c   : > { %v1106_v16 = vadd.f32 %v1105_v14, %v3574_v11 }
 0x37d   : > { %v2989_v17 = vpop.f32.mrf.mxu0 }
 0x37e   : > { %v1121_v18 = vsel %vm1111_vm4, %v1106_v16, -inf }
 0x37f   : > { %1122 = vmax.xlane.f32.xlu0 %v1121_v18  ;;  %v1108_v19 = vpop.f32.mrf.mxu0 }
 0x381   : > { %v2990_v20 = vpop.f32.mrf.mxu0 }
 0x388   : > { %1160 = vrot.lane.b32.xlu1 %v3506_v10, %s3292_s24 }
 0x3f8   : > { %v1114_v21 = vpop.xlane.xlu0 %1113 }
 0x3f9   : > { %v1124_v23 = vsub.f32 %v959_v51, %v1114_v21 }
 0x3fb   : > { %v1128_v27 = vmul.f32 1.442695, %v1124_v23 }
 0x3fc   : > { %v1120_v25 = vpop.xlane.xlu0 %1119 }
 0x3fd   : > { %v1126_v26 = vsub.f32 %v1057_v55, %v1120_v25 }
 0x3ff   : > { %v1132_v29 = vmul.f32 1.442695, %v1126_v26 }
 0x400   : > { %v1117_v30 = vpop.xlane.xlu1 %1116 }
 0x401   : > { %3192 = vpow2.f32 %v1132_v29  ;;  %v1125_v32 = vsub.f32 %v1008_v4, %v1117_v30 }
 0x402   : > { %3194 = vpow2.f32 %v1128_v27 }
 0x403   : > { %v1130_v33 = vmul.f32 1.442695, %v1125_v32 }
 0x404   : > { %v1161_v35 = vpop.permute.xlu1 %1160 }
 0x405   : > { %3196 = vpow2.f32 %v1130_v33  ;;  %v1167_v36 = vsel %vm1165_vm5, %v1161_v35, 0 }
 0x406   : > { %2992 = vmatpush3.bf16.msra.mxu1 %v1167_v36 }
 0x407   : > { %3003 = vmatprep.subr.bf16.mxu1 %v3288_v2 }
 0x408   : > { %v1123_v46 = vpop.xlane.xlu0 %1122 }
 0x409   : > { %v1127_v47 = vsub.f32 %v1106_v16, %v1123_v46 }
 0x40b   : > { %v1134_v49 = vmul.f32 1.442695, %v1127_v47 }
 0x40d   : > { %3198 = vpow2.f32 %v1134_v49 }
 0x40e   : > { %v3193_v37 = vpop.eup %3192 }
 0x40f   : > { %v1142_v39 = vsel %vm1111_vm4, %v3193_v37, 0.0  ;;  %v3195_v40 = vpop.eup %3194 }
 0x410   : > { %1143 = vadd.xlane.f32.xlu1 %v1142_v39  ;;  %v1136_v42 = vsel %vm1111_vm4, %v3195_v40, 0.0 }
 0x412   : > { %v3197_v41 = vpop.eup %3196 }
 0x413   : > { %v1139_v43 = vsel %vm1111_vm4, %v3197_v41, 0.0 }
 0x414   : > { %1137 = vadd.xlane.f32.xlu1 %v1136_v42  ;;  %1140 = vadd.xlane.f32.xlu0 %v1139_v43 }
 0x41a   : > { %v3199_v50 = vpop.eup %3198 }
 0x41b   : > { %v1145_v51 = vsel %vm1111_vm4, %v3199_v50, 0.0 }
 0x425   : > { %1257 = vrot.lane.b32.xlu1 %v3504_v7, %s3292_s24 }
 0x429   : > { %1305 = vrot.lane.b32.xlu1 %v3509_v13, %s3292_s24 }
 0x42a   : > { %1209 = vrot.lane.b32.xlu0 %v3512_v15, %s3292_s24 }
 0x42d   : > { %1405 = vrot.lane.b32.xlu1 %v3512_v15, %s3293_s9 }
 0x431   : > { %1403 = vrot.lane.b32.xlu1 %v3534_v28, %s3294_s12 }
 0x435   : > { %1505 = vrot.lane.b32.xlu1 %v3509_v13, %s3293_s9 }
 0x439   : > { %1503 = vrot.lane.b32.xlu1 %v3542_v31, %s3294_s12 }
 0x449   : > { %1146 = vadd.xlane.f32.xlu0 %v1145_v51 }
 0x45f   : > { %1355 = vrot.lane.b32.xlu0 %v3506_v10, %s3293_s9 }
 0x463   : > { %1353 = vrot.lane.b32.xlu0 %v3522_v24, %s3294_s12 }
 0x467   : > { %1455 = vrot.lane.b32.xlu0 %v3504_v7, %s3293_s9 }
 0x46b   : > { %1453 = vrot.lane.b32.xlu0 %v3520_v22, %s3294_s12  ;;  %s3874_s12 = sld [smem:[#allocation9_spill]] (!%p2863_p5) }
 0x499   : > { %v1144_v52 = vpop.xlane.xlu1 %1143 }
 0x49d   : > { %v1138_v28 = vpop.xlane.xlu1 %1137  ;;  %v1141_v53 = vpop.xlane.xlu0 %1140 }
 0x49e   : > { %3200 = vrcp.f32 %v1138_v28 }
 0x49f   : > { %3202 = vrcp.f32 %v1141_v53 }
 0x4a0   : > { %3204 = vrcp.f32 %v1144_v52 }
 0x4a1   : > { %v1210_v54 = vpop.permute.xlu0 %1209  ;;  %v1258_v55 = vpop.permute.xlu1 %1257 }
 0x4a2   : > { %v1215_v31 = vsel %vm1165_vm5, %v1210_v54, 0  ;;  %v1263_v4 = vsel %vm1165_vm5, %v1258_v55, 0 }
 0x4a3   : > { %2998 = vmatpush3.bf16.msra.mxu0 %v1215_v31 }
 0x4a4   : > { %3009 = vmatprep.subr.bf16.mxu0 %v3288_v2 }
 0x4a5   : > { %v1306_v63 = vpop.permute.xlu1 %1305 }
 0x4a6   : > { %v1311_v5 = vsel %vm1165_vm5, %v1306_v63, 0 }
 0x4a9   : > { %v1406_v17 = vpop.permute.xlu1 %1405 }
 0x4aa   : > { %v1411_v26 = vsel %vm917_vm3, %v1406_v17, 0 }
 0x4ab   : > { %v3201_v56 = vpop.eup %3200 }
 0x4ac   : > { %v3203_v57 = vpop.eup %3202  ;;  %v1149_v24 = vmul.f32 %v3201_v56, %v3195_v40 }
 0x4ad   : > { %v1151_v58 = vmul.f32 %v3203_v57, %v3197_v41  ;;  %v3205_v22 = vpop.eup %3204  ;;  %v1404_v25 = vpop.permute.xlu1 %1403 }
 0x4ae   : > { %v1156_v1 = vpack.c.bf16 %v1149_v24, %v1149_v24  ;;  %v1153_v6 = vmul.f32 %v3205_v22, %v3193_v37 }
 0x4af   : > { %v1157_v3 = vpack.c.bf16 %v1151_v58, %v1151_v58 }
 0x4b0   : > { %2994 = vmatmul.mubr.msk.bf16.vlgmr.msra.gmra.mxu1 %vm1111_vm4, %v1156_v1  ;;  %v1158_v8 = vpack.c.bf16 %v1153_v6, %v1153_v6 }
 0x4b1   : > { %3000 = vmatmul.mubr.msk.bf16.vlgmr.msra.gmra.mxu0 %vm1111_vm4, %v1157_v3  ;;  %3004 = vmatpush3.bf16.msra.mxu1 %v1263_v4  ;;  %v1506_v29 = vpop.permute.xlu1 %1505 }
 0x4b2   : > { %3010 = vmatpush3.bf16.msra.mxu0 %v1311_v5  ;;  %3005 = vmatprep.mubr.msk.bf16.mxu1 %vm3289_vm2, %v3288_v2  ;;  %v1511_v30 = vsel %vm917_vm3, %v1506_v29, 0 }
 0x4b3   : > { %3015 = vmatprep.subr.bf16.mxu1 %v3288_v2  ;;  %3011 = vmatprep.mubr.msk.bf16.mxu0 %vm3289_vm2, %v3288_v2 }
 0x4b4   : > { %3021 = vmatprep.subr.bf16.mxu0 %v3288_v2 }
 0x4b5   : > { %v1504_v32 = vpop.permute.xlu1 %1503 }
 0x4b8   : > { %3006 = vmatmul.mubr.msk.bf16.vlgmr.msra.gmra.mxu1 %vm1111_vm4, %v1158_v8 }
 0x4b9   : > { %3017 = vmatprep.mubr.msk.bf16.mxu1 %vm3289_vm2, %v3288_v2 }
 0x4d2   : > { %v1147_v9 = vpop.xlane.xlu0 %1146 }
 0x4d3   : > { %3206 = vrcp.f32 %v1147_v9 }
 0x4d6   : > { %v1356_v12 = vpop.permute.xlu0 %1355 }
 0x4d7   : > { %v1361_v14 = vsel %vm917_vm3, %v1356_v12, 0 }
 0x4d8   : > { %3016 = vmatpush3.bf16.xpose.msra.mxu1 %v1361_v14 }
 0x4d9   : > { %3027 = vmatprep.subr.bf16.mxu1 %v3288_v2 }
 0x4da   : > { %v1354_v16 = vpop.permute.xlu0 %1353 }
 0x4de   : > { %v1456_v18 = vpop.permute.xlu0 %1455 }
 0x4df   : > { %v1461_v19 = vsel %vm917_vm3, %v1456_v18, 0  ;;  %3018 = vmatmul.mubr.msk.bf16.vlgmr.msra.gmra.mxu1 %vm917_vm3, %v1354_v16 }
 0x4e0   : > { %v3207_v20 = vpop.eup %3206  ;;  %3028 = vmatpush3.bf16.xpose.msra.mxu1 %v1461_v19  ;;  %3029 = vmatprep.mubr.msk.bf16.mxu1 %vm3289_vm2, %v3288_v2 }
 0x4e1   : > { %v1155_v21 = vmul.f32 %v3207_v20, %v3199_v50  ;;  %3039 = vmatprep.subr.bf16.mxu1 %v3288_v2 }
 0x4e2   : > { %v1454_v27 = vpop.permute.xlu0 %1453 }
 0x4e3   : > { %v1159_v23 = vpack.c.bf16 %v1155_v21, %v1155_v21 }
 0x4e5   : > { %3012 = vmatmul.mubr.msk.bf16.vlgmr.msra.gmra.mxu0 %vm1111_vm4, %v1159_v23 }
 0x4e6   : > { %3022 = vmatpush3.bf16.xpose.msra.mxu0 %v1411_v26  ;;  %3023 = vmatprep.mubr.msk.bf16.mxu0 %vm3289_vm2, %v3288_v2 }
 0x4e7   : > { %3030 = vmatmul.mubr.msk.bf16.vlgmr.msra.gmra.mxu1 %vm917_vm3, %v1454_v27  ;;  %3033 = vmatprep.subr.bf16.mxu0 %v3288_v2 }
 0x4e8   : > { %3041 = vmatprep.mubr.msk.bf16.mxu1 %vm3289_vm2, %v3288_v2 }
 0x4ed   : > { %3024 = vmatmul.mubr.msk.bf16.vlgmr.msra.gmra.mxu0 %vm917_vm3, %v1404_v25 }
 0x4ee   : > { %3034 = vmatpush3.bf16.xpose.msra.mxu0 %v1511_v30  ;;  %3035 = vmatprep.mubr.msk.bf16.mxu0 %vm3289_vm2, %v3288_v2 }
 0x4ef   : > { %3045 = vmatprep.subr.bf16.mxu0 %v3288_v2 }
 0x4f5   : > { %3036 = vmatmul.mubr.msk.bf16.vlgmr.msra.gmra.mxu0 %vm917_vm3, %v1504_v32 }
 0x4f6   : > { %3047 = vmatprep.mubr.msk.bf16.mxu0 %vm3289_vm2, %v3288_v2 }
 0x570   : > { %v3634_v33 = vpop.f32.mrf.mxu1 }
 0x571   : > { %v3636_v35 = vpop.f32.mrf.mxu0 }
 0x572   : > { %v2995_v36 = vpop.f32.mrf.mxu1 }
 0x573   : > { %v3001_v37 = vpop.f32.mrf.mxu0 }
 0x574   : > { %v1206_v39 = vpop.f32.mrf.mxu1 }
 0x575   : > { %v1254_v40 = vpop.f32.mrf.mxu0 }
 0x576   : > { %v2996_v41 = vpop.f32.mrf.mxu1 }
 0x577   : > { %v3002_v42 = vpop.f32.mrf.mxu0 }
 0x578   : > { %v3638_v43 = vpop.f32.mrf.mxu1 }
 0x57a   : > { %v3007_v46 = vpop.f32.mrf.mxu1 }
 0x57c   : > { %v1302_v47 = vpop.f32.mrf.mxu1 }
 0x57e   : > { %v3008_v49 = vpop.f32.mrf.mxu1 }
 0x59f   : > { %v1397_v50 = vpop.f32.mrf.mxu1 }
 0x5a0   : > { %v1398_v51 = vadd.f32 %v1397_v50, %v3559_v45 }
 0x5a1   : > { %v3019_v52 = vpop.f32.mrf.mxu1 }
 0x5a2   : > { %v1553_v28 = vsel %vm1111_vm4, %v1398_v51, -inf }
 0x5a3   : > { %1554 = vmax.xlane.f32.xlu0 %v1553_v28  ;;  %v1400_v53 = vpop.f32.mrf.mxu1 }
 0x5a5   : > { %v3642_v54 = vpop.f32.mrf.mxu0  ;;  %v3020_v31 = vpop.f32.mrf.mxu1 }
 0x5a7   : > { %v3013_v55 = vpop.f32.mrf.mxu0  ;;  %v1497_v56 = vpop.f32.mrf.mxu1 }
 0x5a8   : > { %v1498_v57 = vadd.f32 %v1497_v56, %v3562_v48 }
 0x5a9   : > { %v1350_v24 = vpop.f32.mrf.mxu0  ;;  %v3031_v58 = vpop.f32.mrf.mxu1 }
 0x5aa   : > { %v1559_v63 = vsel %vm1111_vm4, %v1498_v57, -inf }
 0x5ab   : > { %1560 = vmax.xlane.f32.xlu0 %v1559_v63  ;;  %v3014_v1 = vpop.f32.mrf.mxu0  ;;  %v1500_v22 = vpop.f32.mrf.mxu1 }
 0x5ad   : > { %v1447_v45 = vpop.f32.mrf.mxu0  ;;  %v3032_v3 = vpop.f32.mrf.mxu1 }
 0x5ae   : > { %v1448_v4 = vadd.f32 %v1447_v45, %v3568_v59 }
 0x5af   : > { %v3025_v5 = vpop.f32.mrf.mxu0 }
 0x5b0   : > { %v1556_v6 = vsel %vm1111_vm4, %v1448_v4, -inf }
 0x5b1   : > { %1557 = vmax.xlane.f32.xlu1 %v1556_v6  ;;  %v1450_v8 = vpop.f32.mrf.mxu0 }
 0x5b3   : > { %v3026_v9 = vpop.f32.mrf.mxu0 }
 0x5b5   : > { %v1547_v12 = vpop.f32.mrf.mxu0 }
 0x5b6   : > { %v1548_v48 = vadd.f32 %v1547_v12, %v3574_v11 }
 0x5b7   : > { %v3037_v14 = vpop.f32.mrf.mxu0 }
 0x5b8   : > { %v1562_v16 = vsel %vm1111_vm4, %v1548_v48, -inf  ;;  %v3180_v14 = vld [vmem:[%s3420_s2 + $0x8] sm:$0xff]  }
 0x5b9   : > { %1563 = vmax.xlane.f32.xlu0 %v1562_v16  ;;  %v1550_v17 = vpop.f32.mrf.mxu0 }
 0x5bb   : > { %v3038_v18 = vpop.f32.mrf.mxu0 }
 0x5c2   : > { %1601 = vrot.lane.b32.xlu1 %v3506_v10, %s3295_s26 }
 0x62c   : > { %v1555_v59 = vpop.xlane.xlu0 %1554 }
 0x62d   : > { %v1565_v19 = vsub.f32 %v1398_v51, %v1555_v59  ;;  %v3181_v59 = vld [vmem:[%s3420_s2] sm:$0xff]   ;;  %s3875_s2 = sld [smem:[#allocation11_spill]] (!%p2863_p5) }
 0x62f   : > { %v1569_v20 = vmul.f32 1.442695, %v1565_v19 }
 0x631   : > { %3208 = vpow2.f32 %v1569_v20 }
 0x634   : > { %v1561_v21 = vpop.xlane.xlu0 %1560 }
 0x635   : > { %v1567_v23 = vsub.f32 %v1498_v57, %v1561_v21 }
 0x637   : > { %v1573_v25 = vmul.f32 1.442695, %v1567_v23 }
 0x639   : > { %3210 = vpow2.f32 %v1573_v25 }
 0x63a   : > { %v1558_v26 = vpop.xlane.xlu1 %1557 }
 0x63b   : > { %v1566_v11 = vsub.f32 %v1448_v4, %v1558_v26 }
 0x63d   : > { %v1571_v27 = vmul.f32 1.442695, %v1566_v11 }
 0x63e   : > { %v3209_v29 = vpop.eup %3208  ;;  %v1602_v30 = vpop.permute.xlu1 %1601 }
 0x63f   : > { %3212 = vpow2.f32 %v1571_v27  ;;  %v1607_v32 = vsel %vm1165_vm5, %v1602_v30, 0  ;;  %v1577_v36 = vsel %vm1111_vm4, %v3209_v29, 0.0 }
 0x640   : > { %1578 = vadd.xlane.f32.xlu1 %v1577_v36  ;;  %3040 = vmatpush3.bf16.msra.mxu1 %v1607_v32 }
 0x641   : > { %3051 = vmatprep.subr.bf16.mxu1 %v3288_v2 }
 0x642   : > { %v1564_v10 = vpop.xlane.xlu0 %1563 }
 0x643   : > { %v1568_v37 = vsub.f32 %v1548_v48, %v1564_v10 }
 0x645   : > { %v1575_v39 = vmul.f32 1.442695, %v1568_v37 }
 0x646   : > { %v3211_v40 = vpop.eup %3210 }
 0x647   : > { %3214 = vpow2.f32 %v1575_v39  ;;  %v1583_v41 = vsel %vm1111_vm4, %v3211_v40, 0.0 }
 0x648   : > { %1584 = vadd.xlane.f32.xlu1 %v1583_v41 }
 0x64c   : > { %v3213_v42 = vpop.eup %3212 }
 0x64d   : > { %v1580_v46 = vsel %vm1111_vm4, %v3213_v42, 0.0 }
 0x64e   : > { %1581 = vadd.xlane.f32.xlu0 %v1580_v46 }
 0x654   : > { %v3215_v47 = vpop.eup %3214 }
 0x655   : > { %v1586_v49 = vsel %vm1111_vm4, %v3215_v47, 0.0 }
 0x656   : > { %1587 = vadd.xlane.f32.xlu0 %v1586_v49 }
 0x659   : > { %1697 = vrot.lane.b32.xlu1 %v3504_v7, %s3295_s26 }
 0x65d   : > { %1745 = vrot.lane.b32.xlu1 %v3509_v13, %s3295_s26 }
 0x66c   : > { %1649 = vrot.lane.b32.xlu0 %v3512_v15, %s3295_s26 }
 0x6c9   : > { %v1579_v50 = vpop.xlane.xlu1 %1578 }
 0x6ca   : > { %3216 = vrcp.f32 %v1579_v50 }
 0x6d1   : > { %v1585_v51 = vpop.xlane.xlu1 %1584 }
 0x6d2   : > { %3218 = vrcp.f32 %v1585_v51  ;;  %v3689_v51 = vld [vmem:[%s3444_s23] sm:$0x3f] }
 0x6d5   : > { %v1698_v31 = vpop.permute.xlu1 %1697 }
 0x6d6   : > { %v1703_v56 = vsel %vm1165_vm5, %v1698_v31, 0 }
 0x6d7   : > { %v3217_v52 = vpop.eup %3216  ;;  %v1582_v28 = vpop.xlane.xlu0 %1581 }
 0x6d8   : > { %3220 = vrcp.f32 %v1582_v28  ;;  %v1590_v53 = vmul.f32 %v3217_v52, %v3209_v29 }
 0x6d9   : > { %v1746_v22 = vpop.permute.xlu1 %1745 }
 0x6da   : > { %v1597_v55 = vpack.c.bf16 %v1590_v53, %v1590_v53  ;;  %v1751_v3 = vsel %vm1165_vm5, %v1746_v22, 0 }
 0x6dc   : > { %3042 = vmatmul.mubr.msk.bf16.vlgmr.msra.gmra.mxu1 %vm1111_vm4, %v1597_v55 }
 0x6dd   : > { %3052 = vmatpush3.bf16.msra.mxu1 %v1703_v56  ;;  %3053 = vmatprep.mubr.msk.bf16.mxu1 %vm3289_vm2, %v3288_v2 }
 0x6de   : > { %3063 = vmatprep.subr.bf16.mxu1 %v3180_v14 }
 0x6df   : > { %v3219_v7 = vpop.eup %3218  ;;  %v1588_v13 = vpop.xlane.xlu0 %1587 }
 0x6e0   : > { %3222 = vrcp.f32 %v1588_v13  ;;  %v1594_v15 = vmul.f32 %v3219_v7, %v3211_v40 }
 0x6e2   : > { %v1599_v57 = vpack.c.bf16 %v1594_v15, %v1594_v15 }
 0x6e3   : > { %v1650_v24 = vpop.permute.xlu0 %1649 }
 0x6e4   : > { %v1655_v58 = vsel %vm1165_vm5, %v1650_v24, 0  ;;  %3054 = vmatmul.mubr.msk.bf16.vlgmr.msra.gmra.mxu1 %vm1111_vm4, %v1599_v57 }
 0x6e5   : > { %v3221_v63 = vpop.eup %3220  ;;  %3046 = vmatpush3.bf16.msra.mxu0 %v1655_v58  ;;  %3064 = vmatpush3.bf16.msra.mxu1 %v3180_v14 }
 0x6e6   : > { %3057 = vmatprep.subr.bf16.mxu0 %v3288_v2  ;;  %v1592_v1 = vmul.f32 %v3221_v63, %v3213_v42  ;;  %3065 = vmatprep.subr.bf16.mxu1 %v3181_v59 }
 0x6e8   : > { %v1598_v45 = vpack.c.bf16 %v1592_v1, %v1592_v1 }
 0x6e9   : > { %3066 = vmatpush3.bf16.msra.mxu1 %v3181_v59 }
 0x6ea   : > { %3048 = vmatmul.mubr.msk.bf16.vlgmr.msra.gmra.mxu0 %vm1111_vm4, %v1598_v45 }
 0x6eb   : > { %3058 = vmatpush3.bf16.msra.mxu0 %v1751_v3  ;;  %3059 = vmatprep.mubr.msk.bf16.mxu0 %vm3289_vm2, %v3288_v2 }
 0x6ed   : > { %v3223_v4 = vpop.eup %3222 }
 0x6ee   : > { %v1596_v5 = vmul.f32 %v3223_v4, %v3215_v47 }
 0x6f0   : > { %v1600_v6 = vpack.c.bf16 %v1596_v5, %v1596_v5 }
 0x6f2   : > { %3060 = vmatmul.mubr.msk.bf16.vlgmr.msra.gmra.mxu0 %vm1111_vm4, %v1600_v6 }
 0x79c   : > { %v1643_v8 = vpop.f32.mrf.mxu1 }
 0x79e   : > { %v3043_v9 = vpop.f32.mrf.mxu1 }
 0x7a0   : > { %v1646_v12 = vpop.f32.mrf.mxu1 }
 0x7a2   : > { %v3044_v48 = vpop.f32.mrf.mxu1 }
 0x7a4   : > { %v1739_v16 = vpop.f32.mrf.mxu1 }
 0x7a6   : > { %v3055_v17 = vpop.f32.mrf.mxu1 }
 0x7a8   : > { %v1742_v18 = vpop.f32.mrf.mxu1 }
 0x7aa   : > { %v1691_v19 = vpop.f32.mrf.mxu0  ;;  %v3056_v20 = vpop.f32.mrf.mxu1 }
 0x7ab   : > { %v3168_v21 = vpack.i.bf16 %v1691_v19, %v1643_v8  ;;  %v3182_v19 = vld [vmem:[%s3425_s25 + $0x8] sm:$0xff]   ;;  %v3183_v20 = vld [vmem:[%s3425_s25] sm:$0xff]   ;;  %s3299_s25 = smov (!%p2863_p5), 3  }
 0x7ac   : > { %v3049_v2 = vpop.f32.mrf.mxu0  ;;  %3071 = vmatprep.subr.bf16.mxu0 %v3182_v19 }
 0x7ad   : > { %3169 = vrot.lane.b32.xlu0 %v3168_v21, %s3296_s1  ;;  %3072 = vmatpush3.bf16.msra.mxu0 %v3182_v19 }
 0x7ae   : > { %v1694_v23 = vpop.f32.mrf.mxu0  ;;  %3073 = vmatprep.subr.bf16.mxu0 %v3183_v20 }
 0x7b0   : > { %v3050_v25 = vpop.f32.mrf.mxu0 }
 0x7b1   : > { %3074 = vmatpush3.bf16.msra.mxu0 %v3183_v20 }
 0x7b2   : > { %v1787_v26 = vpop.f32.mrf.mxu0 }
 0x7b3   : > { %v3173_v11 = vpack.i.bf16 %v1787_v26, %v1739_v16 }
 0x7b4   : > { %v3061_v27 = vpop.f32.mrf.mxu0 }
 0x7b5   : > { %3174 = vrot.lane.b32.xlu1 %v3173_v11, %s3296_s1 }
 0x7b6   : > { %v1790_v29 = vpop.f32.mrf.mxu0 }
 0x7b8   : > { %v3062_v30 = vpop.f32.mrf.mxu0 }
 0x81f   : > { %v3170_v32 = vpop.permute.xlu0 %3169 }
 0x820   : > { %v3172_v36 = vunpack.i.h.bf16 %v3170_v32  ;;  %v3171_v10 = vunpack.i.l.bf16 %v3170_v32 }
 0x822   : > { %v1810_v37 = vsel %vm917_vm3, %v3636_v35, %v3172_v36  ;;  %v1809_v39 = vsel %vm917_vm3, %v3634_v33, %v3171_v10  ;;  %v1822_v33 = vrot.slane %v3689_v51, %v3556_v44 }
 0x823   : > { %v1813_v40 = vpack.c.bf16 %v1810_v37, %v1809_v39  ;;  %v1949_v37 = vsub.s32 1, %v3552_v38 }
 0x825   : > { %3067 = vmatprep.mubr.msk.bf16.mxu1 %vm814_vm1, %v1813_v40 }
 0x827   : > { %v3175_v41 = vpop.permute.xlu1 %3174 }
 0x828   : > { %v3177_v42 = vunpack.i.h.bf16 %v3175_v41  ;;  %v3176_v46 = vunpack.i.l.bf16 %v3175_v41  ;;  %v1950_v41 = vrot.slane %v3689_v51, %v1949_v37 }
 0x82a   : > { %v1812_v47 = vsel %vm917_vm3, %v3642_v54, %v3177_v42  ;;  %v1811_v49 = vsel %vm917_vm3, %v3638_v43, %v3176_v46  ;;  %v1957_v42 = vsub.s32 2, %v3552_v38 }
 0x82b   : > { %v1814_v50 = vpack.c.bf16 %v1812_v47, %v1811_v49 }
 0x82d   : > { %3068 = vmatmul.mubr.msk.bf16.vlgmr.msra.gmra.mxu1 %vm814_vm1, %v1814_v50 }
 0x8ed   : > { %v3069_v35 = vpop.f32.mrf.mxu1 }
 0x8ee   : > { %v1884_v28 = vadd.f32 %v3069_v35, %v1822_v33  ;;  %v1958_v35 = vrot.slane %v3689_v51, %v1957_v42 }
 0x8ef   : > { %v1875_v52 = vpop.f32.mrf.mxu1 }
 0x8f0   : > { %v1876_v53 = vadd.f32 %v1875_v52, %v1822_v33  ;;  %v1892_v13 = vadd.f32 %v1884_v28, %v3483_v62 }
 0x8f1   : > { %v3070_v31 = vpop.f32.mrf.mxu1 }
 0x8f2   : > { %v1890_v55 = vadd.f32 %v1876_v53, %v3479_v60  ;;  %v1887_v54 = vadd.f32 %v3070_v31, %v1822_v33  ;;  %v1900_v24 = vsel %vm814_vm1, %v1892_v13, 0.0 }
 0x8f3   : > { %v1878_v56 = vpop.f32.mrf.mxu1 }
 0x8f4   : > { %v1879_v7 = vadd.f32 %v1878_v56, %v1822_v33  ;;  %v1894_v43 = vsel %vm814_vm1, %v1890_v55, 0.0  ;;  %v1893_v58 = vadd.f32 %v1887_v54, %v3487_v0 }
 0x8f5   : > { %1895 = vadd.xlane.f32.xlu0 %v1894_v43 }
 0x8f6   : > { %v1891_v15 = vadd.f32 %v1879_v7, %v3481_v61  ;;  %v1903_v60 = vsel %vm814_vm1, %v1893_v58, 0.0 }
 0x8f8   : > { %v1897_v57 = vsel %vm814_vm1, %v1891_v15, 0.0 }
 0x8f9   : > { %1898 = vadd.xlane.f32.xlu1 %v1897_v57  ;;  %1901 = vadd.xlane.f32.xlu0 %v1900_v24  ;;  %v3184_v57 = vld [vmem:[%s3430_s18 + $0x38] sm:$0xff]   ;;  %v3185_v24 = vld [vmem:[%s3430_s18 + $0x30] sm:$0xff]  }
 0x8fa   : > { %3079 = vmatprep.subr.bf16.mxu1 %v3184_v57 }
 0x8fb   : > { %3080 = vmatpush3.bf16.msra.mxu1 %v3184_v57 }
 0x8fc   : > { %3081 = vmatprep.subr.bf16.mxu1 %v3185_v24 }
 0x8fd   : > { %1904 = vadd.xlane.f32.xlu0 %v1903_v60  ;;  %v3187_v60 = vld [vmem:[%s3430_s18 + $0x20] sm:$0xff]  }
 0x8ff   : > { %3082 = vmatpush3.bf16.msra.mxu1 %v3185_v24 }
 0x97e   : > { %v1896_v63 = vpop.xlane.xlu0 %1895 }
 0x97f   : > { %v1907_v1 = vmul.f32 0.03125, %v1896_v63  ;;  %v3188_v63 = vld [vmem:[%s3430_s18 + $0x18] sm:$0xff]  }
 0x981   : > { %v1911_v22 = vsub.f32 %v1890_v55, %v1907_v1  ;;  %v3189_v1 = vld [vmem:[%s3430_s18 + $0x10] sm:$0xff]  }
 0x982   : > { %v1899_v45 = vpop.xlane.xlu1 %1898  ;;  %v1902_v3 = vpop.xlane.xlu0 %1901 }
 0x983   : > { %v1908_v62 = vmul.f32 0.03125, %v1899_v45  ;;  %v1909_v4 = vmul.f32 0.03125, %v1902_v3  ;;  %v1915_v5 = vmul.f32 %v1911_v22, %v1911_v22  ;;  %v3191_v45 = vld [vmem:[%s3430_s18] sm:$0xff]  }
 0x984   : > { %v2850_v3 = vld [vmem:[%s662_s21] ss:$0 sm:$0xff] }
 0x985   : > { %v1912_v61 = vsub.f32 %v1891_v15, %v1908_v62  ;;  %v1913_v6 = vsub.f32 %v1892_v13, %v1909_v4  ;;  %v1919_v8 = vsel %vm814_vm1, %v1915_v5, 0.0 }
 0x986   : > { %1920 = vadd.xlane.f32.xlu1 %v1919_v8  ;;  %v1905_v0 = vpop.xlane.xlu0 %1904 }
 0x987   : > { %v1910_v9 = vmul.f32 0.03125, %v1905_v0  ;;  %v1916_v12 = vmul.f32 %v1912_v61, %v1912_v61  ;;  %v1917_v48 = vmul.f32 %v1913_v6, %v1913_v6 }
 0x989   : > { %v1914_v14 = vsub.f32 %v1893_v58, %v1910_v9  ;;  %v1922_v16 = vsel %vm814_vm1, %v1916_v12, 0.0  ;;  %v1925_v17 = vsel %vm814_vm1, %v1917_v48, 0.0  ;;  %v3186_v58 = vld [vmem:[%s3430_s18 + $0x28] sm:$0xff]  }
 0x98a   : > { %1923 = vadd.xlane.f32.xlu0 %v1922_v16  ;;  %1926 = vadd.xlane.f32.xlu1 %v1925_v17 }
 0x98b   : > { %v1918_v18 = vmul.f32 %v1914_v14, %v1914_v14  ;;  %3083 = vmatprep.subr.bf16.mxu1 %v3186_v58 }
 0x98c   : > { %3084 = vmatpush3.bf16.msra.mxu1 %v3186_v58 }
 0x98d   : > { %v1928_v59 = vsel %vm814_vm1, %v1918_v18, 0.0  ;;  %3085 = vmatprep.subr.bf16.mxu1 %v3187_v60 }
 0x98e   : > { %1929 = vadd.xlane.f32.xlu0 %v1928_v59 }
 0x990   : > { %3086 = vmatpush3.bf16.msra.mxu1 %v3187_v60 }
 0x991   : > { %3087 = vmatprep.subr.bf16.mxu1 %v3188_v63 }
 0x994   : > { %3088 = vmatpush3.bf16.msra.mxu1 %v3188_v63 }
 0x995   : > { %3089 = vmatprep.subr.bf16.mxu1 %v3189_v1 }
 0x998   : > { %3090 = vmatpush3.bf16.msra.mxu1 %v3189_v1 }
 0xa0f   : > { %v1921_v21 = vpop.xlane.xlu1 %1920 }
 0xa10   : > { %v1931_v2 = vmul.f32 0.03125, %v1921_v21 }
 0xa12   : > { %v1935_v23 = vadd.f32 1e-05, %v1931_v2 }
 0xa13   : > { %v1927_v25 = vpop.xlane.xlu1 %1926  ;;  %v1924_v26 = vpop.xlane.xlu0 %1923 }
 0xa14   : > { %3224 = vrsqrt.f32 %v1935_v23  ;;  %v1933_v11 = vmul.f32 0.03125, %v1927_v25  ;;  %v1932_v27 = vmul.f32 0.03125, %v1924_v26 }
 0xa16   : > { %v1937_v29 = vadd.f32 1e-05, %v1933_v11  ;;  %v1936_v30 = vadd.f32 1e-05, %v1932_v27 }
 0xa17   : > { %v1930_v32 = vpop.xlane.xlu0 %1929 }
 0xa18   : > { %3226 = vrsqrt.f32 %v1937_v29  ;;  %v1934_v36 = vmul.f32 0.03125, %v1930_v32 }
 0xa19   : > { %3228 = vrsqrt.f32 %v1936_v30 }
 0xa1a   : > { %v1938_v10 = vadd.f32 1e-05, %v1934_v36 }
 0xa1c   : > { %3230 = vrsqrt.f32 %v1938_v10 }
 0xa21   : > { %v3225_v39 = vpop.eup %3224 }
 0xa22   : > { %v1943_v40 = vmul.f32 %v3225_v39, %v1911_v22  ;;  %v3190_v22 = vld [vmem:[%s3430_s18 + $0x8] sm:$0xff]  }
 0xa23   : > { %3091 = vmatprep.subr.bf16.mxu1 %v3190_v22 }
 0xa24   : > { %v1951_v33 = vmul.f32 %v1950_v41, %v1943_v40  ;;  %3092 = vmatpush3.bf16.msra.mxu1 %v3190_v22 }
 0xa25   : > { %v3227_v46 = vpop.eup %3226  ;;  %3093 = vmatprep.subr.bf16.mxu1 %v3191_v45 }
 0xa26   : > { %v3229_v47 = vpop.eup %3228  ;;  %v1945_v49 = vmul.f32 %v3227_v46, %v1913_v6  ;;  %v3711_v55 = vadd.f32 %v1958_v35, %v1951_v33 }
 0xa27   : > { %v1944_v50 = vmul.f32 %v3229_v47, %v1912_v61 }
 0xa28   : > { %v1953_v31 = vmul.f32 %v1950_v41, %v1945_v49  ;;  %3094 = vmatpush3.bf16.msra.mxu1 %v3191_v45 }
 0xa29   : > { %v3231_v52 = vpop.eup %3230  ;;  %v1952_v28 = vmul.f32 %v1950_v41, %v1944_v50 }
 0xa2a   : > { %v1946_v53 = vmul.f32 %v3231_v52, %v1914_v14  ;;  %v3717_v43 = vadd.f32 %v1958_v35, %v1953_v31 }
 0xa2b   : > { %v3713_v56 = vadd.f32 %v1958_v35, %v1952_v28 }
 0xa2c   : > { %v1954_v54 = vmul.f32 %v1950_v41, %v1946_v53 }
 0xa2d   : > { %v1963_v7 = vpack.c.bf16 %v3713_v56, %v3711_v55 }
 0xa2e   : > { %v3719_v13 = vadd.f32 %v1958_v35, %v1954_v54 }
 0xa2f   : > { %3075 = vmatprep.mubr.msk.bf16.mxu0 %vm814_vm1, %v1963_v7 }
 0xa30   : > { %v1964_v15 = vpack.c.bf16 %v3719_v13, %v3717_v43 }
 0xa32   : > { %3076 = vmatmul.mubr.msk.bf16.vlgmr.msra.gmra.mxu0 %vm814_vm1, %v1964_v15  ;;  %v2099_v15 = vsub.s32 3, %v3552_v38 }
 0xa34   : > { %v2100_v57 = vrot.slane %v3689_v51, %v2099_v15 }
 0xaf2   : > { %v3077_v62 = vpop.f32.mrf.mxu0 }
 0xaf3   : > { %v2037_v4 = vadd.f32 %v3077_v62, %v2850_v3 }
 0xaf4   : > { %v2028_v5 = vpop.f32.mrf.mxu0 }
 0xaf5   : > { %v2045_v61 = vmul.f32 %v2037_v4, %v2037_v4  ;;  %v2029_v6 = vadd.f32 %v2850_v3, %v2028_v5 }
 0xaf6   : > { %v3078_v8 = vpop.f32.mrf.mxu0 }
 0xaf7   : > { %v2049_v0 = vmul.f32 %v2045_v61, %v2037_v4  ;;  %v2043_v9 = vmul.f32 %v2029_v6, %v2029_v6  ;;  %v2040_v12 = vadd.f32 %v3078_v8, %v2850_v3 }
 0xaf8   : > { %v2031_v48 = vpop.f32.mrf.mxu0 }
 0xaf9   : > { %v2053_v14 = vmul.f32 0.044715, %v2049_v0  ;;  %v2047_v16 = vmul.f32 %v2043_v9, %v2029_v6  ;;  %v2046_v17 = vmul.f32 %v2040_v12, %v2040_v12  ;;  %v2032_v18 = vadd.f32 %v2850_v3, %v2031_v48 }
 0xafb   : > { %v2057_v59 = vadd.f32 %v2053_v14, %v2037_v4  ;;  %v2051_v19 = vmul.f32 0.044715, %v2047_v16  ;;  %v2050_v20 = vmul.f32 %v2046_v17, %v2040_v12  ;;  %v2044_v21 = vmul.f32 %v2032_v18, %v2032_v18 }
 0xafd   : > { %v2061_v2 = vmul.f32 0.7978846, %v2057_v59  ;;  %v2055_v23 = vadd.f32 %v2051_v19, %v2029_v6  ;;  %v2054_v25 = vmul.f32 0.044715, %v2050_v20  ;;  %v2048_v26 = vmul.f32 %v2044_v21, %v2032_v18 }
 0xaff   : > { %v2059_v11 = vmul.f32 0.7978846, %v2055_v23  ;;  %v2058_v27 = vadd.f32 %v2054_v25, %v2040_v12  ;;  %v2052_v29 = vmul.f32 0.044715, %v2048_v26  ;;  %3232 = vtanh.f32 %v2061_v2 }
 0xb01   : > { %3234 = vtanh.f32 %v2059_v11  ;;  %v2062_v30 = vmul.f32 0.7978846, %v2058_v27  ;;  %v2056_v32 = vadd.f32 %v2052_v29, %v2032_v18 }
 0xb03   : > { %3236 = vtanh.f32 %v2062_v30  ;;  %v2060_v36 = vmul.f32 0.7978846, %v2056_v32 }
 0xb05   : > { %3238 = vtanh.f32 %v2060_v36 }
 0xb0c   : > { %v3233_v10 = vpop.eup %3232 }
 0xb0d   : > { %v2069_v41 = vadd.f32 1.0, %v3233_v10 }
 0xb0e   : > { %v3235_v37 = vpop.eup %3234 }
 0xb0f   : > { %v2067_v39 = vadd.f32 1.0, %v3235_v37  ;;  %v2073_v33 = vmul.f32 0.5, %v2069_v41 }
 0xb10   : > { %v3237_v40 = vpop.eup %3236 }
 0xb11   : > { %v2070_v42 = vadd.f32 1.0, %v3237_v40  ;;  %v2071_v50 = vmul.f32 0.5, %v2067_v39  ;;  %v2077_v31 = vmul.f32 %v2073_v33, %v2037_v4 }
 0xb12   : > { %v3239_v46 = vpop.eup %3238 }
 0xb13   : > { %v2074_v47 = vmul.f32 0.5, %v2070_v42  ;;  %v2068_v49 = vadd.f32 1.0, %v3239_v46  ;;  %v2075_v28 = vmul.f32 %v2071_v50, %v2029_v6  ;;  %v2264_v50 = vsub.s32 5, %v3552_v38 }
 0xb15   : > { %v2072_v35 = vmul.f32 0.5, %v2068_v49  ;;  %v2078_v52 = vmul.f32 %v2074_v47, %v2040_v12  ;;  %v2256_v49 = vsub.s32 4, %v3552_v38 }
 0xb17   : > { %v2076_v53 = vmul.f32 %v2072_v35, %v2032_v18  ;;  %v2080_v7 = vpack.c.bf16 %v2078_v52, %v2077_v31  ;;  %v2257_v33 = vrot.slane %v3689_v51, %v2256_v49  ;;  %v2265_v52 = vrot.slane %v3689_v51, %v2264_v50 }
 0xb19   : > { %v2079_v54 = vpack.c.bf16 %v2076_v53, %v2075_v28 }
 0xb1b   : > { %3095 = vmatprep.mubr.bf16.mxu1 %v2079_v54 }
 0xb1c   : > { %3096 = vmatmul.mubr.bf16.vlgmr.msra.gmra.mxu1 %v2080_v7 }
 0xbdc   : > { %v3097_v24 = vpop.f32.mrf.mxu1 }
 0xbdd   : > { %v2192_v60 = vadd.f32 %v3097_v24, %v2100_v57 }
 0xbde   : > { %v2183_v58 = vpop.f32.mrf.mxu1 }
 0xbdf   : > { %v2184_v63 = vadd.f32 %v2183_v58, %v2100_v57  ;;  %v2200_v5 = vadd.f32 %v2192_v60, %v3717_v43 }
 0xbe0   : > { %v3098_v1 = vpop.f32.mrf.mxu1 }
 0xbe1   : > { %v2198_v22 = vadd.f32 %v2184_v63, %v3711_v55  ;;  %v2195_v3 = vadd.f32 %v3098_v1, %v2100_v57  ;;  %v2208_v8 = vsel %vm814_vm1, %v2200_v5, 0.0 }
 0xbe2   : > { %v2186_v45 = vpop.f32.mrf.mxu1 }
 0xbe3   : > { %v2187_v62 = vadd.f32 %v2186_v45, %v2100_v57  ;;  %v2202_v4 = vsel %vm814_vm1, %v2198_v22, 0.0  ;;  %v2201_v0 = vadd.f32 %v2195_v3, %v3719_v13 }
 0xbe4   : > { %2203 = vadd.xlane.f32.xlu1 %v2202_v4 }
 0xbe5   : > { %v2199_v61 = vadd.f32 %v2187_v62, %v3713_v56  ;;  %v2211_v55 = vsel %vm814_vm1, %v2201_v0, 0.0 }
 0xbe7   : > { %v2205_v6 = vsel %vm814_vm1, %v2199_v61, 0.0 }
 0xbe8   : > { %2206 = vadd.xlane.f32.xlu0 %v2205_v6  ;;  %2209 = vadd.xlane.f32.xlu1 %v2208_v8 }
 0xbec   : > { %2212 = vadd.xlane.f32.xlu0 %v2211_v55 }
 0xc6d   : > { %v2204_v9 = vpop.xlane.xlu1 %2203 }
 0xc6e   : > { %v2214_v12 = vmul.f32 0.03125, %v2204_v9 }
 0xc70   : > { %v2218_v48 = vsub.f32 %v2198_v22, %v2214_v12 }
 0xc71   : > { %v2207_v14 = vpop.xlane.xlu0 %2206  ;;  %v2210_v16 = vpop.xlane.xlu1 %2209 }
 0xc72   : > { %v2215_v43 = vmul.f32 0.03125, %v2207_v14  ;;  %v2216_v17 = vmul.f32 0.03125, %v2210_v16  ;;  %v2222_v18 = vmul.f32 %v2218_v48, %v2218_v48 }
 0xc74   : > { %v2219_v56 = vsub.f32 %v2199_v61, %v2215_v43  ;;  %v2220_v59 = vsub.f32 %v2200_v5, %v2216_v17  ;;  %v2226_v19 = vsel %vm814_vm1, %v2222_v18, 0.0 }
 0xc75   : > { %v2213_v20 = vpop.xlane.xlu0 %2212  ;;  %2227 = vadd.xlane.f32.xlu1 %v2226_v19 }
 0xc76   : > { %v2217_v13 = vmul.f32 0.03125, %v2213_v20  ;;  %v2223_v21 = vmul.f32 %v2219_v56, %v2219_v56  ;;  %v2224_v2 = vmul.f32 %v2220_v59, %v2220_v59 }
 0xc78   : > { %v2221_v23 = vsub.f32 %v2201_v0, %v2217_v13  ;;  %v2229_v25 = vsel %vm814_vm1, %v2223_v21, 0.0  ;;  %v2232_v26 = vsel %vm814_vm1, %v2224_v2, 0.0 }
 0xc79   : > { %2230 = vadd.xlane.f32.xlu0 %v2229_v25  ;;  %2233 = vadd.xlane.f32.xlu1 %v2232_v26 }
 0xc7a   : > { %v2225_v11 = vmul.f32 %v2221_v23, %v2221_v23 }
 0xc7c   : > { %v2235_v27 = vsel %vm814_vm1, %v2225_v11, 0.0 }
 0xc7d   : > { %2236 = vadd.xlane.f32.xlu0 %v2235_v27 }
 0xcfe   : > { %v2228_v29 = vpop.xlane.xlu1 %2227 }
 0xcff   : > { %v2238_v30 = vmul.f32 0.03125, %v2228_v29 }
 0xd01   : > { %v2242_v32 = vadd.f32 1e-05, %v2238_v30 }
 0xd02   : > { %v2231_v36 = vpop.xlane.xlu0 %2230  ;;  %v2234_v10 = vpop.xlane.xlu1 %2233 }
 0xd03   : > { %3240 = vrsqrt.f32 %v2242_v32  ;;  %v2239_v37 = vmul.f32 0.03125, %v2231_v36  ;;  %v2240_v39 = vmul.f32 0.03125, %v2234_v10 }
 0xd05   : > { %v2243_v40 = vadd.f32 1e-05, %v2239_v37  ;;  %v2244_v41 = vadd.f32 1e-05, %v2240_v39 }
 0xd06   : > { %v2237_v42 = vpop.xlane.xlu0 %2236 }
 0xd07   : > { %3242 = vrsqrt.f32 %v2243_v40  ;;  %v2241_v46 = vmul.f32 0.03125, %v2237_v42 }
 0xd08   : > { %3244 = vrsqrt.f32 %v2244_v41 }
 0xd09   : > { %v2245_v47 = vadd.f32 1e-05, %v2241_v46 }
 0xd0b   : > { %3246 = vrsqrt.f32 %v2245_v47 }
 0xd10   : > { %v3241_v35 = vpop.eup %3240 }
 0xd11   : > { %v2250_v28 = vmul.f32 %v3241_v35, %v2218_v48 }
 0xd13   : > { %v2258_v53 = vmul.f32 %v2257_v33, %v2250_v28 }
 0xd14   : > { %v3243_v31 = vpop.eup %3242 }
 0xd15   : > { %v3245_v54 = vpop.eup %3244  ;;  %v2266_v7 = vadd.f32 %v2265_v52, %v2258_v53  ;;  %v2251_v15 = vmul.f32 %v3243_v31, %v2219_v56 }
 0xd16   : > { %v2252_v57 = vmul.f32 %v3245_v54, %v2220_v59 }
 0xd17   : > { %2270 = vst.msk [vmem:[#allocation2] sm:$0xff] %vm814_vm1, %v2266_v7  ;;  %v2259_v24 = vmul.f32 %v2257_v33, %v2251_v15 }
 0xd18   : > { %v3247_v58 = vpop.eup %3246  ;;  %v2260_v60 = vmul.f32 %v2257_v33, %v2252_v57 }
 0xd19   : > { %v2267_v63 = vadd.f32 %v2265_v52, %v2259_v24  ;;  %v2253_v1 = vmul.f32 %v3247_v58, %v2221_v23 }
 0xd1a   : > { %v2268_v22 = vadd.f32 %v2265_v52, %v2260_v60 }
 0xd1b   : > { %2271 = vst.msk [vmem:[#allocation2 + $0x8] sm:$0xff] %vm814_vm1, %v2267_v63  ;;  %v2261_v45 = vmul.f32 %v2257_v33, %v2253_v1  ;;  %2277 = sbr.rel (%p2863_p5) target bundleno = 4735 (0x127f), region = 100 }
 0xd1c   : > { %2272 = vst.msk [vmem:[#allocation2 + $0x10] sm:$0xff] %vm814_vm1, %v2268_v22 }
 0xd1d   : > { %v2269_v51 = vadd.f32 %v2265_v52, %v2261_v45 }
 0xd1f   : > { %2273 = vst.msk [vmem:[#allocation2 + $0x18] sm:$0xff] %vm814_vm1, %v2269_v51 }
 0xd20   : > { %v2281_v3 = vand.u32 127, %v767_v34  ;;  %v2282_v62 = vmul.u32 8, %v3552_v38  ;;  %v2363_v4 = vld [vmem:[%s3843_s5 + $0x18] sm:$0xff]  ;;  %v3297_v5 = vmov 0.0   ;;  %vm3298_vm6 = vmmov 0   ;;  %v2362_v34 = vld [vmem:[%s3843_s5 + $0x10] sm:$0xff] }
 0xd21   : > { %3099 = vmatprep.subr.mxu0 %v3297_v5  ;;  %3107 = vmatprep.mubr.msk.f32.mxu0 %vm3298_vm6, %v3297_v5  ;;  %v2361_v38 = vld [vmem:[%s3843_s5 + $0x8] sm:$0xff]  ;;  %v2360_v6 = vld [vmem:[%s3843_s5] sm:$0xff]  ;;  %vm2445_vm8 = vcmask 125952   ;;  %vm2502_vm11 = vcmask 27648   ;;  %vm2522_vm12 = vcmask 31744   ;;  %vm2684_vm13 = vcmask 23552  }
 0xd22   : > { %3100 = vmatpush3.msra.mxu0 %v2269_v51  ;;  %3110 = vmatprep.subr.mxu1 %v3297_v5  ;;  %vm2283_vm7 = vcmp.eq.s32.totalorder %v2281_v3, %v2282_v62  ;;  %v2867_v55 = vld [vmem:[%s3844_s6] ss:$0 sm:$0xff]  ;;  %v2600_v32 = vld [vmem:[%s3875_s2 + $0x8] sm:$0xff]  ;;  %vm2686_vm14 = vcmask 56320  }
 0xd23   : > { %3101 = vmatprep.subr.mxu0 %v3297_v5  ;;  %3111 = vmatpush3.msra.mxu1 %v2363_v4  ;;  %v2864_v61 = vsel %vm2283_vm7, 1.0, %v3297_v5  ;;  %v2868_v12 = vld [vmem:[%s3845_s7] ss:$0 sm:$0xff] }
 0xd24   : > { %3102 = vmatpush3.msra.mxu0 %v2268_v22  ;;  %3112 = vmatprep.subr.mxu1 %v3297_v5  ;;  %v2359_v20 = vld [vmem:[%s3874_s12] sm:$0xf] }
 0xd25   : > { %3103 = vmatprep.subr.mxu0 %v3297_v5  ;;  %3113 = vmatpush3.msra.mxu1 %v2362_v34  ;;  %vm2500_vm10 = vcmp.gt.f32.partialorder %v2359_v20, 0.0  ;;  %v2599_v39 = vld [vmem:[%s3875_s2] sm:$0xff] }
 0xd26   : > { %3104 = vmatpush3.msra.mxu0 %v2267_v63  ;;  %3114 = vmatprep.subr.mxu1 %v3297_v5  ;;  %v2869_v40 = vld [vmem:[%s3876_s22] ss:$0 sm:$0xff] }
 0xd27   : > { %3105 = vmatprep.subr.mxu0 %v3297_v5  ;;  %3115 = vmatpush3.msra.mxu1 %v2361_v38  ;;  %v2872_v47 = vld [vmem:[%s3877_s30] ss:$0 sm:$0xff] }
 0xd28   : > { %3106 = vmatpush3.msra.mxu0 %v2266_v7  ;;  %3116 = vmatprep.subr.mxu1 %v3297_v5 }
 0xd29   : > { %3108 = vmatmul.mubr.msk.f32.vlgmr.msra.gmra.mxu0 %vm814_vm1, %v2864_v61  ;;  %3118 = vmatprep.mubr.msk.f32.mxu1 %vm3298_vm6, %v3297_v5 }
 0xd2a   : > { %3121 = vmatprep.subr.mxu0 %v3297_v5  ;;  %3123 = vmatprep.mubr.msk.f32.mxu0 %vm3298_vm6, %v3297_v5 }
 0xd2b   : > { %3117 = vmatpush3.msra.mxu1 %v2360_v6 }
 0xd2c   : > { %3126 = vmatprep.subr.mxu1 %v3297_v5 }
 0xde9   : > { %v2355_v8 = vpop.f32.mrf.mxu0 }
 0xdea   : > { %3119 = vmatmul.mubr.msk.f32.vlgmr.msra.gmra.mxu1 %vm814_vm1, %v2355_v8 }
 0xdeb   : > { %v3109_v0 = vpop.f32.mrf.mxu0  ;;  %3130 = vmatprep.mubr.msk.f32.mxu1 %vm3298_vm6, %v3297_v5  ;;  %3127 = vmatpush3.msra.mxu1 %v2600_v32 }
 0xdec   : > { %3128 = vmatprep.subr.mxu1 %v3297_v5 }
 0xded   : > { %3129 = vmatpush3.msra.mxu1 %v2599_v39 }
 0xeaa   : > { %v2433_v9 = vpop.f32.mrf.mxu1 }
 0xeab   : > { %3122 = vmatpush3.msk.msra.mxu0 %vm1165_vm5, %v2433_v9  ;;  %v2444_v48 = vmul.f32 %v2867_v55, %v2433_v9  ;;  %v2456_v43 = vmul.f32 %v2868_v12, %v2433_v9 }
 0xeac   : > { %v3120_v14 = vpop.f32.mrf.mxu1 }
 0xead   : > { %v2446_v16 = vsel %vm2445_vm8, %v2444_v48, 0.0  ;;  %v2457_v17 = vsel %vm2445_vm8, %v2456_v43, 0.0 }
 0xeae   : > { %2447 = vadd.xlane.f32.xlu0 %v2446_v16 }
 0xeb2   : > { %2458 = vadd.xlane.f32.xlu0 %v2457_v17 }
 0xf37   : > { %v2448_v18 = vpop.xlane.xlu0 %2447 }
 0xf38   : > { %2460 = vxpose.xlu1.b32.start.end [1/1] (short) (narrow) %v2448_v18, 8 }
 0xf3b   : > { %v2459_v19 = vpop.xlane.xlu0 %2458 }
 0xfb4   : > { %v2476_v56 = vpop.trf.xlu1 }
 0xfb5   : > { %v2495_v59 = vrot.slane %v2476_v56, %v3556_v44 }
 0xfb7   : > { %v2496_v13 = vadd.f32 %v2495_v59, %v2459_v19 }
 0xfb9   : > { %vm2497_vm9 = vcmp.gt.f32.partialorder %v2496_v13, 0.0  ;;  %v2498_v21 = vmul.f32 0.2, %v2496_v13 }
 0xfbb   : > { %v2499_v2 = vsel %vm2497_vm9, %v2496_v13, %v2498_v21 }
 0xfbc   : > { %v2501_v23 = vsel %vm2500_vm10, %v2499_v2, -1e+09 }
 0xfbd   : > { %v2503_v25 = vsel %vm2502_vm11, %v2501_v23, -inf }
 0xfbe   : > { %2504 = vmax.xlane.f32.xlu1 %v2503_v25 }
0x1047   : > { %v2505_v26 = vpop.xlane.xlu1 %2504 }
0x1048   : > { %v2506_v11 = vsub.f32 %v2501_v23, %v2505_v26 }
0x104a   : > { %v2507_v27 = vmul.f32 1.442695, %v2506_v11 }
0x104c   : > { %3248 = vpow2.f32 %v2507_v27 }
0x1059   : > { %v3249_v44 = vpop.eup %3248 }
0x105a   : > { %v2509_v29 = vsel %vm2502_vm11, %v3249_v44, 0.0 }
0x105b   : > { %2510 = vadd.xlane.f32.xlu0 %v2509_v29 }
0x10e4   : > { %v2511_v30 = vpop.xlane.xlu0 %2510 }
0x10e5   : > { %3250 = vrcp.f32 %v2511_v30 }
0x10f2   : > { %v3251_v36 = vpop.eup %3250 }
0x10f3   : > { %v2513_v10 = vmul.f32 %v3251_v36, %v3249_v44 }
0x10f5   : > { %v2514_v37 = vsel %vm2500_vm10, %v2513_v10, 0.0 }
0x10f6   : > { %2681 = vrot.lane.b32.xlu0 %v2514_v37, %s3299_s25  ;;  %3124 = vmatmul.mubr.msk.f32.vlgmr.msra.gmra.mxu0 %vm2522_vm12, %v2514_v37 }
0x1168   : > { %v2682_v33 = vpop.permute.xlu0 %2681 }
0x11b6   : > { %v2595_v41 = vpop.f32.mrf.mxu0 }
0x11b7   : > { %v2596_v42 = vadd.f32 %v2869_v40, %v2595_v41 }
0x11b8   : > { %v3125_v46 = vpop.f32.mrf.mxu0 }
0x11b9   : > { %3131 = vmatmul.mubr.msk.f32.vlgmr.msra.gmra.mxu1 %vm917_vm3, %v2596_v42 }
0x1279   : > { %v2677_v49 = vpop.f32.mrf.mxu1 }
0x127a   : > { %v2678_v50 = vadd.f32 %v2872_v47, %v2677_v49 }
0x127b   : > { %v3132_v35 = vpop.f32.mrf.mxu1 }
0x127c   : > { %v2685_v52 = vsel %vm2684_vm13, %v2678_v50, %v2682_v33 }
0x127d   : > { %v2687_v28 = vsel %vm2686_vm14, %v2685_v52, 0.0 }
0x127e   : > { %2688 = vst [vmem:[#allocation3] sm:$0xf] %v2687_v28 }
0x127f PF: > { %p3137_p6 = scmp.eq.s32.totalorder %s3402_s28, 3  ;;  %s3300_s8 = smov [#allocation3]  }
0x1280   : > { %s2696_s19 = sshll.u32 %s3300_s8, 4  ;;  %s2697_s19 = int_to_ptr.vmem [resolvable:$true] %s2696_s19 }
0x1281   : > { %s3252_s10 = scalar_lea.vmem %s2697_s19, 64  ;;  %p3259_p10 = scmp.lt.s32.totalorder %s2697_s19, %s2697_s19 }
0x1282   : > { %p3253_p7 = scmp.ne.s32.totalorder %s2697_s19, %s3252_s10  ;;  %p3260_p11 = scmp.lt.s32.totalorder %s3252_s10, %s3252_s10 }
0x1284   : > { %p3254_p8 = pnand %p3253_p7, %p3137_p6  ;;  %p3261_p12 = por %p3260_p11, %p3259_p10 }
0x1286   : > { %p3255_p9 = pneg %p3254_p8 }
0x1288   : > { %p3262_p13 = pnand %p3261_p12, %p3255_p9 }
0x128a   : > { %3265 = shalt.err (!%p3262_p13)
}
0x128b   : > { %s3878_s9 = sld [smem:[#allocation15_spill]] }
0x1291   : > { %3134 = dma.vmem_to_hbm [thread:$0]  (%p3137_p6), %s2697_s19, 64, %s3878_s9, [#allocation4]  }
0x1292   : > { %3281 = dma.done.wait (%p3137_p6), [#allocation4], 64  }
0x1293   : > { %3283 = vsyncadd (%p3137_p6), [#allocation4], 4294967232 }
0x1294 PF: > { %s3879_s12 = sld [smem:[#allocation6_spill]] }
0x129a   : > { %s29_s27 = sadd.s32 1, %s3879_s12  }
0x129b   : > { %p26_p0 = scmp.ge.s32.totalorder %s29_s27, 6  }
0x129d   :  { %28 = sbr.rel (!%p26_p0) target bundleno = 11 (0xb), region = 145 }
0x12a2   :  { %2709 = vsyncpa [#allocation4], 1 }
0x12a3   :  { %2711 = vsyncpa [#allocation4 + $0x1], 1 }

</bundles_post_ra>
